<compile_context>
chip_gen: v5e
topology: v5e:2x2
jax: 0.10.0
libtpu: 0.0.40
codegen_flags: <defaults>
</compile_context>

<pallas_src>
import functools

import jax
import jax.numpy as jnp
from jax.experimental import pallas as pl
from jax.experimental.pallas import tpu as pltpu


def _round_up(x, m):
    return ((x + m - 1) // m) * m


def _fc1_plan(in_dim, k_tile_max):
    """K-tile for the fc1 reduction axis, and the padded input width."""
    k_tile = min(k_tile_max, _round_up(in_dim, 128))
    in_pad = _round_up(in_dim, k_tile)
    return k_tile, in_pad


def mlp_kernel(x_ref,
               w1, b1, w2, b2, w3, b3, w4, b4, w5, b5, w6, b6,
               o_ref, acc_ref, *, out_dim):
    """One (batch_tile, K-tile) grid step. fc1 is K-accumulated; the rest of
    the network + softmax runs on the last K step only."""
    k = pl.program_id(1)
    nk = pl.num_programs(1)

    @pl.when(k == 0)
    def _():
        acc_ref[...] = jnp.zeros_like(acc_ref)

    # fc1 partial product for this K tile: bf16 inputs, f32 accumulation (MXU).
    acc_ref[...] += jnp.dot(x_ref[...], w1[...],
                            preferred_element_type=jnp.float32)

    @pl.when(k == nk - 1)
    def _():
        def linear_relu(h, w_ref, b_ref):
            out = jnp.dot(h, w_ref[...], preferred_element_type=jnp.float32)
            # Carry activations as bf16 between layers: halves live vregs in
            # the epilogue at large batch tiles (dot inputs are bf16 anyway).
            return jnp.maximum(out + b_ref[...], 0.0).astype(jnp.bfloat16)

        h = jnp.maximum(acc_ref[...] + b1[...], 0.0).astype(jnp.bfloat16)
        h = linear_relu(h, w2, b2)
        h = linear_relu(h, w3, b3)
        h = linear_relu(h, w4, b4)
        h = linear_relu(h, w5, b5)

        logits = jnp.dot(h, w6[...], preferred_element_type=jnp.float32) + b6[...]

        # Mask padded class lanes so they contribute exactly 0 to the softmax.
        lane = jax.lax.broadcasted_iota(jnp.int32, logits.shape, 1)
        logits = jnp.where(lane < out_dim, logits, -1e30)

        m = jnp.max(logits, axis=-1, keepdims=True)
        e = jnp.exp(logits - m)
        # Exact divide: runs once per batch tile in the epilogue, so it is
        # essentially free and keeps row sums at f32 precision.
        o_ref[...] = (e / jnp.sum(e, axis=-1, keepdims=True)).astype(o_ref.dtype)


def prepare_params(params, *, k_tile_max=4096):
    """One-time weight preparation (hoisted out of the per-call hot path):
    zero-pad every feature axis to a multiple of 128 (fc1's input axis to a
    multiple of the K tile) and cast weights to bf16 for the MXU.

    params = [(w1, b1), ..., (w6, b6)], w_i: (in, out), b_i: (1, out).
    Returns a flat list [w1_p, b1_p, ..., w6_p, b6_p]."""
    in_dim = params[0][0].shape[0]
    _, in_pad = _fc1_plan(in_dim, k_tile_max)

    dims = [in_dim] + [w.shape[1] for w, _ in params]
    dims_pad = [in_pad] + [_round_up(d, 128) for d in dims[1:]]

    flat = []
    for li, (w, b) in enumerate(params):
        dp_in, dp_out = dims_pad[li], dims_pad[li + 1]
        w_p = jnp.zeros((dp_in, dp_out), jnp.bfloat16).at[
            :w.shape[0], :w.shape[1]].set(w.astype(jnp.bfloat16))
        b_p = jnp.zeros((1, dp_out), jnp.float32).at[
            :, :b.shape[1]].set(b.astype(jnp.float32))
        flat.extend([w_p, b_p])
    return flat


@functools.partial(jax.jit,
                   static_argnames=("out_dim", "k_tile_max", "max_batch_tile"))
def mlp_forward(x, flat, *, out_dim, k_tile_max=4096, max_batch_tile=512):
    """x: (B, in_dim) f32; flat: output of prepare_params (same k_tile_max)."""
    B, in_dim = x.shape
    k_tile, in_pad = _fc1_plan(in_dim, k_tile_max)
    assert flat[0].shape[0] == in_pad, \
        "params were not prepared with the same k_tile_max"

    h1_pad = flat[0].shape[1]     # fc1 output width (padded)
    out_pad = flat[-2].shape[1]   # class width (padded to >= 128, lane-dense)

    # ---- batch (MXU M) tiling ------------------------------------------
    # Single tile when possible so w1 (the dominant HBM traffic) streams once;
    # otherwise max_batch_tile-row tiles.  512 rows clears the compute/HBM
    # balance point on v6e/v7x; 256+ suffices on v5e.
    b_pad128 = max(_round_up(B, 128), 128)
    if b_pad128 <= max_batch_tile:
        batch_tile = b_pad128
        b_pad = b_pad128
    else:
        batch_tile = max_batch_tile
        b_pad = _round_up(B, batch_tile)

    x_p = jnp.zeros((b_pad, in_pad), jnp.bfloat16).at[:B, :in_dim].set(
        x.astype(jnp.bfloat16))

    def const_spec(arr):
        # Whole (small, padded) array resident in VMEM for every grid step.
        return pl.BlockSpec(arr.shape, lambda i, k: (0,) * arr.ndim)

    in_specs = [pl.BlockSpec((batch_tile, k_tile), lambda i, k: (i, k)),   # x tile
                pl.BlockSpec((k_tile, h1_pad), lambda i, k: (k, 0))]       # w1 K tile
    in_specs += [const_spec(a) for a in flat[1:]]                          # b1, w2..b6

    grid = (b_pad // batch_tile, in_pad // k_tile)

    # ---- right-sized VMEM request (v7x only has 64 MiB physical) --------
    const_bytes = sum(int(a.size) * a.dtype.itemsize for a in flat[1:])
    vmem_bytes = (2 * batch_tile * k_tile * 2        # x tile, double-buffered bf16
                  + 2 * k_tile * h1_pad * 2          # w1 K tile, double-buffered bf16
                  + 2 * const_bytes                  # resident constants (2 bufs)
                  + batch_tile * h1_pad * 4          # f32 accumulator scratch
                  + 2 * batch_tile * out_pad * 4)    # output tile, double-buffered
    vmem_limit = min(_round_up(int(vmem_bytes * 1.5) + (2 << 20), 1 << 20),
                     96 << 20)

    out = pl.pallas_call(
        functools.partial(mlp_kernel, out_dim=out_dim),
        grid_spec=pltpu.PrefetchScalarGridSpec(
            num_scalar_prefetch=0,
            grid=grid,
            in_specs=in_specs,
            out_specs=pl.BlockSpec((batch_tile, out_pad), lambda i, k: (i, 0)),
            scratch_shapes=[pltpu.VMEM((batch_tile, h1_pad), jnp.float32)]),
        out_shape=jax.ShapeDtypeStruct((b_pad, out_pad), jnp.float32),
        compiler_params=pltpu.CompilerParams(
            dimension_semantics=("parallel", "arbitrary"),
            vmem_limit_bytes=vmem_limit),
    )(x_p, *flat)

    return out[:B, :out_dim]


def init_params(key, input_size, hidden_size, output_size):
    """Deterministic init mimicking nn.Linear's U(-1/sqrt(fan_in), 1/sqrt(fan_in))."""
    dims = [input_size] + [hidden_size] * 5 + [output_size]
    params = []
    for i in range(6):
        fan_in, fan_out = dims[i], dims[i + 1]
        key, kw, kb = jax.random.split(key, 3)
        bound = 1.0 / jnp.sqrt(fan_in)
        w = jax.random.uniform(kw, (fan_in, fan_out), jnp.float32, -bound, bound)
        b = jax.random.uniform(kb, (1, fan_out), jnp.float32, -bound, bound)
        params.append((w, b))
    return params


def mlp_reference(x, params):
    h = x
    for i, (w, b) in enumerate(params):
        h = h @ w + b
        if i < 5:
            h = jnp.maximum(h, 0.0)
    return jax.nn.softmax(h, axis=-1)


if __name__ == "__main__":
    # Small shapes consistent with the module's forward:
    # (batch, input_size) -> (batch, output_size). hidden=96 / output=8 are not
    # multiples of 128 on purpose, to exercise the padding + lane-masking paths.
    batch = 16
    input_size = 512      # stands in for adjust_size * adjust_size = 40000
    hidden_size = 96      # stands in for 150
    output_size = 8       # stands in for len(np.unique(y))

    key = jax.random.PRNGKey(0)
    key, kx = jax.random.split(key)
    x = jax.random.normal(kx, (batch, input_size), jnp.float32)
    params = init_params(key, input_size, hidden_size, output_size)

    # k_tile_max=256 -> two K tiles over the 512-wide fc1, so the accumulator
    # (pl.when init / finalize) path is exercised even at demo shapes.
    # (Production shapes would use the default k_tile_max=4096.)
    K_TILE_MAX = 256
    flat = prepare_params(params, k_tile_max=K_TILE_MAX)   # one-time prep
    flat = jax.block_until_ready(flat)

    out = mlp_forward(x, flat, out_dim=output_size, k_tile_max=K_TILE_MAX)
    out = jax.block_until_ready(out)

    ref = mlp_reference(x, params)
    assert out.shape == (batch, output_size)
    # Exact softmax divide -> row sums are f32-exact; bf16 matmul inputs still
    # need a loose tolerance vs the f32 reference.
    assert jnp.allclose(jnp.sum(out, axis=-1), 1.0, atol=1e-3), \
        "softmax rows must sum to 1"
    assert jnp.allclose(out, ref, atol=5e-2, rtol=5e-2), "mismatch vs f32 reference"

    print("KERNEL_OK")
</pallas_src>

<mosaic_0001>
module attributes {stable_mosaic.version = 11 : i64} {
  func.func @mlp_kernel(%arg0: i32, %arg1: i32, %arg2: memref<128x256xbf16, #tpu.memory_space<vmem>>, %arg3: memref<256x128xbf16, #tpu.memory_space<vmem>>, %arg4: memref<1x128xf32, #tpu.memory_space<vmem>>, %arg5: memref<128x128xbf16, #tpu.memory_space<vmem>>, %arg6: memref<1x128xf32, #tpu.memory_space<vmem>>, %arg7: memref<128x128xbf16, #tpu.memory_space<vmem>>, %arg8: memref<1x128xf32, #tpu.memory_space<vmem>>, %arg9: memref<128x128xbf16, #tpu.memory_space<vmem>>, %arg10: memref<1x128xf32, #tpu.memory_space<vmem>>, %arg11: memref<128x128xbf16, #tpu.memory_space<vmem>>, %arg12: memref<1x128xf32, #tpu.memory_space<vmem>>, %arg13: memref<128x128xbf16, #tpu.memory_space<vmem>>, %arg14: memref<1x128xf32, #tpu.memory_space<vmem>>, %arg15: memref<128x128xf32, #tpu.memory_space<vmem>>, %arg16: memref<128x128xf32, #tpu.memory_space<vmem>>) attributes {dimension_semantics = [#tpu.dimension_semantics<parallel>, #tpu.dimension_semantics<arbitrary>], iteration_bounds = array<i64: 1, 2>, scalar_prefetch = 0 : i64, scratch_operands = 1 : i64, tpu.core_type = #tpu.core_type<tc>, window_params = [{transform_indices = @transform_0, window_bounds = array<i64: 128, 256>}, {transform_indices = @transform_1, window_bounds = array<i64: 256, 128>}, {pipeline_mode = #tpu.pipeline_mode<synchronous>, transform_indices = @transform_2, window_bounds = array<i64: 1, 128>}, {pipeline_mode = #tpu.pipeline_mode<synchronous>, transform_indices = @transform_3, window_bounds = array<i64: 128, 128>}, {pipeline_mode = #tpu.pipeline_mode<synchronous>, transform_indices = @transform_4, window_bounds = array<i64: 1, 128>}, {pipeline_mode = #tpu.pipeline_mode<synchronous>, transform_indices = @transform_5, window_bounds = array<i64: 128, 128>}, {pipeline_mode = #tpu.pipeline_mode<synchronous>, transform_indices = @transform_6, window_bounds = array<i64: 1, 128>}, {pipeline_mode = #tpu.pipeline_mode<synchronous>, transform_indices = @transform_7, window_bounds = array<i64: 128, 128>}, {pipeline_mode = #tpu.pipeline_mode<synchronous>, transform_indices = @transform_8, window_bounds = array<i64: 1, 128>}, {pipeline_mode = #tpu.pipeline_mode<synchronous>, transform_indices = @transform_9, window_bounds = array<i64: 128, 128>}, {pipeline_mode = #tpu.pipeline_mode<synchronous>, transform_indices = @transform_10, window_bounds = array<i64: 1, 128>}, {pipeline_mode = #tpu.pipeline_mode<synchronous>, transform_indices = @transform_11, window_bounds = array<i64: 128, 128>}, {pipeline_mode = #tpu.pipeline_mode<synchronous>, transform_indices = @transform_12, window_bounds = array<i64: 1, 128>}, {transform_indices = @transform_13, window_bounds = array<i64: 128, 128>}]} {
    %c0_i32 = arith.constant 0 : i32
    %0 = arith.cmpi eq, %arg1, %c0_i32 : i32
    %1 = arith.extui %0 : i1 to i32
    %c0_i32_0 = arith.constant 0 : i32
    %2 = arith.cmpi ne, %1, %c0_i32_0 : i32
    scf.if %2 {
      %cst_9 = arith.constant 0.000000e+00 : f32
      %12 = vector.broadcast %cst_9 : f32 to vector<128x128xf32>
      %c0_10 = arith.constant 0 : index
      %c0_11 = arith.constant 0 : index
      %13 = vector.load %arg16[%c0_10, %c0_11] : memref<128x128xf32, #tpu.memory_space<vmem>>, vector<128x128xf32>
      tpu.vector_store %arg16[%c0_10, %c0_11], %12 {strides = array<i32>} : memref<128x128xf32, #tpu.memory_space<vmem>>, vector<128x128xf32>,
    } else {
    }
    %c0 = arith.constant 0 : index
    %c0_1 = arith.constant 0 : index
    %3 = vector.load %arg16[%c0, %c0_1] : memref<128x128xf32, #tpu.memory_space<vmem>>, vector<128x128xf32>
    %c0_2 = arith.constant 0 : index
    %c0_3 = arith.constant 0 : index
    %4 = vector.load %arg2[%c0_2, %c0_3] : memref<128x256xbf16, #tpu.memory_space<vmem>>, vector<128x256xbf16>
    %c0_4 = arith.constant 0 : index
    %c0_5 = arith.constant 0 : index
    %5 = vector.load %arg3[%c0_4, %c0_5] : memref<256x128xbf16, #tpu.memory_space<vmem>>, vector<256x128xbf16>
    %cst = arith.constant dense<0.000000e+00> : vector<128x128xf32>
    %6 = tpu.matmul %4, %5, %cst {dimension_numbers = #tpu.dot_dimension_numbers<[1], [0], [0], [1], [0, 0, 1, 1], [], []>} : vector<128x256xbf16>, vector<256x128xbf16>, vector<128x128xf32> -> vector<128x128xf32>
    %7 = arith.addf %3, %6 : vector<128x128xf32>
    %c0_6 = arith.constant 0 : index
    %c0_7 = arith.constant 0 : index
    %8 = vector.load %arg16[%c0_6, %c0_7] : memref<128x128xf32, #tpu.memory_space<vmem>>, vector<128x128xf32>
    tpu.vector_store %arg16[%c0_6, %c0_7], %7 {strides = array<i32>} : memref<128x128xf32, #tpu.memory_space<vmem>>, vector<128x128xf32>,
    %c1_i32 = arith.constant 1 : i32
    %9 = arith.cmpi eq, %arg1, %c1_i32 : i32
    %10 = arith.extui %9 : i1 to i32
    %c0_i32_8 = arith.constant 0 : i32
    %11 = arith.cmpi ne, %10, %c0_i32_8 : i32
    scf.if %11 {
      %c0_9 = arith.constant 0 : index
      %c0_10 = arith.constant 0 : index
      %12 = vector.load %arg16[%c0_9, %c0_10] : memref<128x128xf32, #tpu.memory_space<vmem>>, vector<128x128xf32>
      %c0_11 = arith.constant 0 : index
      %c0_12 = arith.constant 0 : index
      %13 = vector.load %arg4[%c0_11, %c0_12] : memref<1x128xf32, #tpu.memory_space<vmem>>, vector<1x128xf32>
      %14 = vector.broadcast %13 : vector<1x128xf32> to vector<128x128xf32>
      %15 = arith.addf %12, %14 : vector<128x128xf32>
      %cst_13 = arith.constant 0.000000e+00 : f32
      %16 = vector.broadcast %cst_13 : f32 to vector<128x128xf32>
      %17 = arith.maximumf %15, %16 : vector<128x128xf32>
      %18 = arith.truncf %17 : vector<128x128xf32> to vector<128x128xbf16>
      %c0_14 = arith.constant 0 : index
      %c0_15 = arith.constant 0 : index
      %19 = vector.load %arg5[%c0_14, %c0_15] : memref<128x128xbf16, #tpu.memory_space<vmem>>, vector<128x128xbf16>
      %cst_16 = arith.constant dense<0.000000e+00> : vector<128x128xf32>
      %20 = tpu.matmul %18, %19, %cst_16 {dimension_numbers = #tpu.dot_dimension_numbers<[1], [0], [0], [1], [0, 0, 1, 1], [], []>} : vector<128x128xbf16>, vector<128x128xbf16>, vector<128x128xf32> -> vector<128x128xf32>
      %c0_17 = arith.constant 0 : index
      %c0_18 = arith.constant 0 : index
      %21 = vector.load %arg6[%c0_17, %c0_18] : memref<1x128xf32, #tpu.memory_space<vmem>>, vector<1x128xf32>
      %22 = vector.broadcast %21 : vector<1x128xf32> to vector<128x128xf32>
      %23 = arith.addf %20, %22 : vector<128x128xf32>
      %cst_19 = arith.constant 0.000000e+00 : f32
      %24 = vector.broadcast %cst_19 : f32 to vector<128x128xf32>
      %25 = arith.maximumf %23, %24 : vector<128x128xf32>
      %26 = arith.truncf %25 : vector<128x128xf32> to vector<128x128xbf16>
      %c0_20 = arith.constant 0 : index
      %c0_21 = arith.constant 0 : index
      %27 = vector.load %arg7[%c0_20, %c0_21] : memref<128x128xbf16, #tpu.memory_space<vmem>>, vector<128x128xbf16>
      %cst_22 = arith.constant dense<0.000000e+00> : vector<128x128xf32>
      %28 = tpu.matmul %26, %27, %cst_22 {dimension_numbers = #tpu.dot_dimension_numbers<[1], [0], [0], [1], [0, 0, 1, 1], [], []>} : vector<128x128xbf16>, vector<128x128xbf16>, vector<128x128xf32> -> vector<128x128xf32>
      %c0_23 = arith.constant 0 : index
      %c0_24 = arith.constant 0 : index
      %29 = vector.load %arg8[%c0_23, %c0_24] : memref<1x128xf32, #tpu.memory_space<vmem>>, vector<1x128xf32>
      %30 = vector.broadcast %29 : vector<1x128xf32> to vector<128x128xf32>
      %31 = arith.addf %28, %30 : vector<128x128xf32>
      %cst_25 = arith.constant 0.000000e+00 : f32
      %32 = vector.broadcast %cst_25 : f32 to vector<128x128xf32>
      %33 = arith.maximumf %31, %32 : vector<128x128xf32>
      %34 = arith.truncf %33 : vector<128x128xf32> to vector<128x128xbf16>
      %c0_26 = arith.constant 0 : index
      %c0_27 = arith.constant 0 : index
      %35 = vector.load %arg9[%c0_26, %c0_27] : memref<128x128xbf16, #tpu.memory_space<vmem>>, vector<128x128xbf16>
      %cst_28 = arith.constant dense<0.000000e+00> : vector<128x128xf32>
      %36 = tpu.matmul %34, %35, %cst_28 {dimension_numbers = #tpu.dot_dimension_numbers<[1], [0], [0], [1], [0, 0, 1, 1], [], []>} : vector<128x128xbf16>, vector<128x128xbf16>, vector<128x128xf32> -> vector<128x128xf32>
      %c0_29 = arith.constant 0 : index
      %c0_30 = arith.constant 0 : index
      %37 = vector.load %arg10[%c0_29, %c0_30] : memref<1x128xf32, #tpu.memory_space<vmem>>, vector<1x128xf32>
      %38 = vector.broadcast %37 : vector<1x128xf32> to vector<128x128xf32>
      %39 = arith.addf %36, %38 : vector<128x128xf32>
      %cst_31 = arith.constant 0.000000e+00 : f32
      %40 = vector.broadcast %cst_31 : f32 to vector<128x128xf32>
      %41 = arith.maximumf %39, %40 : vector<128x128xf32>
      %42 = arith.truncf %41 : vector<128x128xf32> to vector<128x128xbf16>
      %c0_32 = arith.constant 0 : index
      %c0_33 = arith.constant 0 : index
      %43 = vector.load %arg11[%c0_32, %c0_33] : memref<128x128xbf16, #tpu.memory_space<vmem>>, vector<128x128xbf16>
      %cst_34 = arith.constant dense<0.000000e+00> : vector<128x128xf32>
      %44 = tpu.matmul %42, %43, %cst_34 {dimension_numbers = #tpu.dot_dimension_numbers<[1], [0], [0], [1], [0, 0, 1, 1], [], []>} : vector<128x128xbf16>, vector<128x128xbf16>, vector<128x128xf32> -> vector<128x128xf32>
      %c0_35 = arith.constant 0 : index
      %c0_36 = arith.constant 0 : index
      %45 = vector.load %arg12[%c0_35, %c0_36] : memref<1x128xf32, #tpu.memory_space<vmem>>, vector<1x128xf32>
      %46 = vector.broadcast %45 : vector<1x128xf32> to vector<128x128xf32>
      %47 = arith.addf %44, %46 : vector<128x128xf32>
      %cst_37 = arith.constant 0.000000e+00 : f32
      %48 = vector.broadcast %cst_37 : f32 to vector<128x128xf32>
      %49 = arith.maximumf %47, %48 : vector<128x128xf32>
      %50 = arith.truncf %49 : vector<128x128xf32> to vector<128x128xbf16>
      %c0_38 = arith.constant 0 : index
      %c0_39 = arith.constant 0 : index
      %51 = vector.load %arg13[%c0_38, %c0_39] : memref<128x128xbf16, #tpu.memory_space<vmem>>, vector<128x128xbf16>
      %cst_40 = arith.constant dense<0.000000e+00> : vector<128x128xf32>
      %52 = tpu.matmul %50, %51, %cst_40 {dimension_numbers = #tpu.dot_dimension_numbers<[1], [0], [0], [1], [0, 0, 1, 1], [], []>} : vector<128x128xbf16>, vector<128x128xbf16>, vector<128x128xf32> -> vector<128x128xf32>
      %c0_41 = arith.constant 0 : index
      %c0_42 = arith.constant 0 : index
      %53 = vector.load %arg14[%c0_41, %c0_42] : memref<1x128xf32, #tpu.memory_space<vmem>>, vector<1x128xf32>
      %54 = vector.broadcast %53 : vector<1x128xf32> to vector<128x128xf32>
      %55 = arith.addf %52, %54 : vector<128x128xf32>
      %56 = tpu.iota {dimensions = array<i32: 1>} : vector<128x128xi32>
      %c8_i32 = arith.constant 8 : i32
      %57 = vector.broadcast %c8_i32 : i32 to vector<128x128xi32>
      %58 = arith.cmpi slt, %56, %57 : vector<128x128xi32>
      %cst_43 = arith.constant -1.000000e+30 : f32
      %59 = vector.broadcast %cst_43 : f32 to vector<128x128xf32>
      %60 = arith.select %58, %55, %59 : vector<128x128xi1>, vector<128x128xf32>
      %cst_44 = arith.constant dense<0xFF800000> : vector<128xf32>
      %61 = vector.multi_reduction <maximumf>, %60, %cst_44 [1] : vector<128x128xf32> to vector<128xf32>
      %62 = vector.shape_cast %61 : vector<128xf32> to vector<128x1xf32>
      %63 = vector.broadcast %62 : vector<128x1xf32> to vector<128x128xf32>
      %64 = arith.subf %60, %63 : vector<128x128xf32>
      %65 = math.exp %64 : vector<128x128xf32>
      %cst_45 = arith.constant dense<0.000000e+00> : vector<128xf32>
      %66 = vector.multi_reduction <add>, %65, %cst_45 [1] : vector<128x128xf32> to vector<128xf32>
      %67 = vector.shape_cast %66 : vector<128xf32> to vector<128x1xf32>
      %68 = vector.broadcast %67 : vector<128x1xf32> to vector<128x128xf32>
      %69 = arith.divf %65, %68 : vector<128x128xf32>
      %c0_46 = arith.constant 0 : index
      %c0_47 = arith.constant 0 : index
      %70 = vector.load %arg15[%c0_46, %c0_47] : memref<128x128xf32, #tpu.memory_space<vmem>>, vector<128x128xf32>
      tpu.vector_store %arg15[%c0_46, %c0_47], %69 {strides = array<i32>} : memref<128x128xf32, #tpu.memory_space<vmem>>, vector<128x128xf32>,
    } else {
    }
    return
  }
  func.func @transform_0(%arg0: i32, %arg1: i32) -> (i32, i32) {
    %c0_i32 = arith.constant 0 : i32
    return %arg0, %arg1 : i32, i32
  }
  func.func @transform_1(%arg0: i32, %arg1: i32) -> (i32, i32) {
    %c0_i32 = arith.constant 0 : i32
    %c0_i32_0 = arith.constant 0 : i32
    return %arg1, %c0_i32 : i32, i32
  }
  func.func @transform_2(%arg0: i32, %arg1: i32) -> (i32, i32) {
    %c0_i32 = arith.constant 0 : i32
    %c0_i32_0 = arith.constant 0 : i32
    %c0_i32_1 = arith.constant 0 : i32
    return %c0_i32, %c0_i32_0 : i32, i32
  }
  func.func @transform_3(%arg0: i32, %arg1: i32) -> (i32, i32) {
    %c0_i32 = arith.constant 0 : i32
    %c0_i32_0 = arith.constant 0 : i32
    %c0_i32_1 = arith.constant 0 : i32
    return %c0_i32, %c0_i32_0 : i32, i32
  }
  func.func @transform_4(%arg0: i32, %arg1: i32) -> (i32, i32) {
    %c0_i32 = arith.constant 0 : i32
    %c0_i32_0 = arith.constant 0 : i32
    %c0_i32_1 = arith.constant 0 : i32
    return %c0_i32, %c0_i32_0 : i32, i32
  }
  func.func @transform_5(%arg0: i32, %arg1: i32) -> (i32, i32) {
    %c0_i32 = arith.constant 0 : i32
    %c0_i32_0 = arith.constant 0 : i32
    %c0_i32_1 = arith.constant 0 : i32
    return %c0_i32, %c0_i32_0 : i32, i32
  }
  func.func @transform_6(%arg0: i32, %arg1: i32) -> (i32, i32) {
    %c0_i32 = arith.constant 0 : i32
    %c0_i32_0 = arith.constant 0 : i32
    %c0_i32_1 = arith.constant 0 : i32
    return %c0_i32, %c0_i32_0 : i32, i32
  }
  func.func @transform_7(%arg0: i32, %arg1: i32) -> (i32, i32) {
    %c0_i32 = arith.constant 0 : i32
    %c0_i32_0 = arith.constant 0 : i32
    %c0_i32_1 = arith.constant 0 : i32
    return %c0_i32, %c0_i32_0 : i32, i32
  }
  func.func @transform_8(%arg0: i32, %arg1: i32) -> (i32, i32) {
    %c0_i32 = arith.constant 0 : i32
    %c0_i32_0 = arith.constant 0 : i32
    %c0_i32_1 = arith.constant 0 : i32
    return %c0_i32, %c0_i32_0 : i32, i32
  }
  func.func @transform_9(%arg0: i32, %arg1: i32) -> (i32, i32) {
    %c0_i32 = arith.constant 0 : i32
    %c0_i32_0 = arith.constant 0 : i32
    %c0_i32_1 = arith.constant 0 : i32
    return %c0_i32, %c0_i32_0 : i32, i32
  }
  func.func @transform_10(%arg0: i32, %arg1: i32) -> (i32, i32) {
    %c0_i32 = arith.constant 0 : i32
    %c0_i32_0 = arith.constant 0 : i32
    %c0_i32_1 = arith.constant 0 : i32
    return %c0_i32, %c0_i32_0 : i32, i32
  }
  func.func @transform_11(%arg0: i32, %arg1: i32) -> (i32, i32) {
    %c0_i32 = arith.constant 0 : i32
    %c0_i32_0 = arith.constant 0 : i32
    %c0_i32_1 = arith.constant 0 : i32
    return %c0_i32, %c0_i32_0 : i32, i32
  }
  func.func @transform_12(%arg0: i32, %arg1: i32) -> (i32, i32) {
    %c0_i32 = arith.constant 0 : i32
    %c0_i32_0 = arith.constant 0 : i32
    %c0_i32_1 = arith.constant 0 : i32
    return %c0_i32, %c0_i32_0 : i32, i32
  }
  func.func @transform_13(%arg0: i32, %arg1: i32) -> (i32, i32) {
    %c0_i32 = arith.constant 0 : i32
    %c0_i32_0 = arith.constant 0 : i32
    return %arg0, %c0_i32 : i32, i32
  }
}

</mosaic_0001>

<bundles_post_ra>
// kernel: mlp_forward.1
= control target key start
LH: loop header
LB: loop body
LE: loop exit
PB: predicated region body
PF: predicated region fallthrough
CT: control target
= control target key end

     0   :  { %s3672_s0 = inlined_call_operand.vmem [shape: bf16[128,512], index: 0, kind: input, shape index: {}]   ;;  %s3673_s1 = inlined_call_operand.vmem [shape: bf16[512,128], index: 1, kind: input, shape index: {}]   ;;  %s3674_s2 = inlined_call_operand.vmem [shape: f32[1,128], index: 2, kind: input, shape index: {}]   ;;  %s3675_s3 = inlined_call_operand.vmem [shape: bf16[128,128], index: 3, kind: input, shape index: {}]   ;;  %s3676_s4 = inlined_call_operand.hbm [shape: f32[1,128], index: 4, kind: input, shape index: {}]   ;;  %s3677_s5 = inlined_call_operand.vmem [shape: bf16[128,128], index: 5, kind: input, shape index: {}]   ;;  %s3678_s6 = inlined_call_operand.vmem [shape: f32[1,128], index: 6, kind: input, shape index: {}]   ;;  %s3679_s7 = inlined_call_operand.hbm [shape: bf16[128,128], index: 7, kind: input, shape index: {}]   ;;  %s3680_s8 = inlined_call_operand.vmem [shape: f32[1,128], index: 8, kind: input, shape index: {}]   ;;  %s3681_s9 = inlined_call_operand.hbm [shape: bf16[128,128], index: 9, kind: input, shape index: {}]   ;;  %s3682_s10 = inlined_call_operand.vmem [shape: f32[1,128], index: 10, kind: input, shape index: {}]   ;;  %s3683_s11 = inlined_call_operand.hbm [shape: bf16[128,128], index: 11, kind: input, shape index: {}]   ;;  %s3684_s12 = inlined_call_operand.vmem [shape: f32[1,128], index: 12, kind: input, shape index: {}]   ;;  %s3685_s13 = inlined_call_operand.vmem [shape: f32[128,128], index: 13, kind: output, shape index: {}]  }
   0x1   :  { %3689 = sst [smem:[#allocation16_spill]] %s3677_s5 }
   0x2   :  { %3690 = sst [smem:[#allocation17_spill]] %s3678_s6 }
   0x3   :  { %3691 = sst [smem:[#allocation18_spill]] %s3679_s7 }
   0x4   :  { %3692 = sst [smem:[#allocation19_spill]] %s3680_s8 }
   0x5   :  { %3693 = sst [smem:[#allocation20_spill]] %s3682_s10 }
   0x6   :  { %3694 = sst [smem:[#allocation21_spill]] %s3684_s12 }
   0x7   :  { %3695 = sst [smem:[#allocation22_spill]] %s3685_s13 }
   0x8   :  { %18 = vsyncpa [#allocation5], 0 }
   0x9   :  { %19 = vsyncpa [#allocation7], 0 }
   0xa   :  { %20 = vsyncpa [#allocation10], 0  ;;  %s3118_s25 = smov 0   ;;  %s3120_s26 = smov 0  }
   0xb   :  { %s3122_s27 = smov 0   ;;  %s3124_s28 = smov 0  }
   0xc   :  { %s3126_s29 = smov 0  }
   0xd LB: > { %s2290_s30 = sadd.s32 4294967295, %s3039_s29   ;;  %s35_s14 = sadd.s32 1, %s3035_s28  ;;  %s3039_s29 = sphi %s3126_s29, %s26_s29   ;;  %s3035_s28 = sphi %s3124_s28, %s3714_s28   ;;  %s3031_s27 = sphi %s3122_s27, %s3713_s27   ;;  %s3027_s26 = sphi %s3120_s26, %s3712_s26   ;;  %s3023_s25 = sphi %s3118_s25, %s3711_s25  }
   0xe   : > { %p36_p0 = scmp.ge.s32.totalorder %s35_s14, 2  ;;  %s47_s15 = sadd.s32 1, %s3027_s26 }
   0xf   : > { %p54_p1 = scmp.ne.s32.totalorder %s3027_s26, %s3023_s25  ;;  %p55_p2 = scmp.eq.s32.totalorder %s3039_s29, 0 }
  0x10   : > { %s3716_s14 = smov (%p36_p0, %s35_s14), 0  ;;  %p2291_p4 = scmp.ge.s32.totalorder %s3039_s29, 1 }
  0x11   : > { %3696 = sst [smem:[#allocation14_spill]] %s3716_s14  ;;  %p3151_p3 = por %p55_p2, %p54_p1 }
  0x12   : > { %s43_s17 = ssub.s32 %s3035_s28, %s3716_s14  ;;  %p354_p5 = scmp.lt.s32.totalorder %s3039_s29, 3 }
  0x13   : > { %p45_p6 = scmp.eq.s32.totalorder %s43_s17, 0  ;;  %p3163_p8 = scmp.eq.s32.totalorder %s2290_s30, 0 }
  0x14   : > { %p3159_p7 = pnand %p2291_p4, %p354_p5  ;;  %s3701_s7 = sld [smem:[#allocation18_spill]] }
  0x15   : > { %s3168_s20 = scalar_select %p45_p6, %s3027_s26, %s47_s15  }
  0x16   : > { %p2731_p9 = pneg %p3159_p7  ;;  %s3041_s30 = smov [#allocation6]  }
  0x17   : > { %3700 = sst [smem:[#allocation15_spill]] %s3168_s20  ;;  %s391_s17 = sshll.u32 %s3041_s30, 4  ;;  %s392_s17 = int_to_ptr.vmem [resolvable:$true] %s391_s17 }
  0x18   : > { %p3177_p10 = pnand %p3163_p8, %p2731_p9  ;;  %s3042_s15 = smov 64  }
  0x19   : > { %s3043_s14 = smov 4   ;;  %s372_s21 = sshll.u32 %s3676_s4, 4  ;;  %s373_s21 = int_to_ptr.hbm [resolvable:$true] %s372_s21 }
  0x1a   : > { %s389_s23 = sshll.u32 %s3701_s7, 4  ;;  %s406_s12 = sshll.u32 %s3681_s9, 4  ;;  %s390_s23 = int_to_ptr.hbm [resolvable:$true] %s389_s23  ;;  %s407_s12 = int_to_ptr.hbm [resolvable:$true] %s406_s12 }
  0x1b   : > { %2737 = dma.hbm_to_vmem [thread:$0]  (!%p3177_p10), %s390_s23, 1024, %s392_s17, [#allocation7], %s3042_s15, %s3042_s15, %s3043_s14  }
  0x1c   : > { %s3044_s10 = smov [#allocation4]   ;;  %s3045_s30 = smov [#allocation8]  }
  0x1d   : > { %s374_s8 = sshll.u32 %s3044_s10, 4  ;;  %s408_s6 = sshll.u32 %s3045_s30, 4  ;;  %s375_s8 = int_to_ptr.vmem [resolvable:$true] %s374_s8  ;;  %s409_s6 = int_to_ptr.vmem [resolvable:$true] %s408_s6 }
  0x1e   : > { %2734 = dma.hbm_to_vmem [thread:$0]  (!%p3177_p10), %s373_s21, 16, %s375_s8, [#allocation5]  }
  0x1f   : > { %s423_s17 = sshll.u32 %s3683_s11, 4  ;;  %s3046_s13 = smov [#allocation9]   ;;  %s424_s17 = int_to_ptr.hbm [resolvable:$true] %s423_s17 }
  0x20   : > { %2740 = dma.hbm_to_vmem [thread:$0]  (!%p3177_p10), %s407_s12, 1024, %s409_s6, [#allocation7], %s3042_s15, %s3042_s15, %s3043_s14  }
  0x21   : > { %s425_s7 = sshll.u32 %s3046_s13, 4  ;;  %p2296_p11 = scmp.ge.s32.totalorder %s3039_s29, 2  ;;  %s426_s7 = int_to_ptr.vmem [resolvable:$true] %s425_s7 }
  0x22   : > { %2743 = dma.hbm_to_vmem [thread:$0]  (!%p3177_p10), %s424_s17, 1024, %s426_s7, [#allocation10], %s3042_s15, %s3042_s15, %s3043_s14  }
  0x23   : > { %438 = sbr.rel (%p2296_p11) target bundleno = 60 (0x3c), region = 60 }
  0x28   : > { %441 = sbr.rel (!%p3151_p3) target bundleno = 60 (0x3c), region = 64  ;;  %s443_s8 = sand.u32 (%p3151_p3), 1, %s3027_s26  }
  0x29   : > { %s2602_s5 = sshll.u32 (%p3151_p3), %s3035_s28, 3  ;;  %s2297_s10 = sshll.u32 (%p3151_p3), %s443_s8, 7 }
  0x2a   : > { %s3206_s6 = scalar_lea.vmem (%p3151_p3), %s3672_s0, %s2602_s5  ;;  %s445_s12 = scalar_lea.vmem (%p3151_p3), [#allocation3], %s2297_s10 }
  0x2b   : > { %v510_v0 = vld [vmem:[%s3206_s6] sm:$0xff] (%p3151_p3)  ;;  %v512_v1 = vld [vmem:[%s3206_s6 + $0x10] sm:$0xff] (%p3151_p3) }
  0x2c   : > { %v514_v2 = vld [vmem:[%s3206_s6 + $0x20] sm:$0xff] (%p3151_p3)  ;;  %511 = vst [vmem:[%s445_s12] sm:$0xff] (%p3151_p3), %v510_v0  ;;  %v516_v3 = vld [vmem:[%s3206_s6 + $0x30] sm:$0xff] (%p3151_p3) }
  0x2d   : > { %513 = vst [vmem:[%s445_s12 + $0x8] sm:$0xff] %v512_v1  ;;  %v518_v4 = vld [vmem:[%s3206_s6 + $0x40] sm:$0xff]  ;;  %v520_v5 = vld [vmem:[%s3206_s6 + $0x50] sm:$0xff] }
  0x2e   : > { %515 = vst [vmem:[%s445_s12 + $0x10] sm:$0xff] %v514_v2  ;;  %v522_v6 = vld [vmem:[%s3206_s6 + $0x60] sm:$0xff]  ;;  %v524_v7 = vld [vmem:[%s3206_s6 + $0x70] sm:$0xff] }
  0x2f   : > { %517 = vst [vmem:[%s445_s12 + $0x18] sm:$0xff] %v516_v3  ;;  %v526_v8 = vld [vmem:[%s3206_s6 + $0x80] sm:$0xff]  ;;  %v528_v9 = vld [vmem:[%s3206_s6 + $0x90] sm:$0xff] }
  0x30   : > { %519 = vst [vmem:[%s445_s12 + $0x20] sm:$0xff] %v518_v4  ;;  %v530_v10 = vld [vmem:[%s3206_s6 + $0xa0] sm:$0xff]  ;;  %v532_v11 = vld [vmem:[%s3206_s6 + $0xb0] sm:$0xff] }
  0x31   : > { %521 = vst [vmem:[%s445_s12 + $0x28] sm:$0xff] %v520_v5  ;;  %v534_v12 = vld [vmem:[%s3206_s6 + $0xc0] sm:$0xff]  ;;  %v536_v13 = vld [vmem:[%s3206_s6 + $0xd0] sm:$0xff] }
  0x32   : > { %523 = vst [vmem:[%s445_s12 + $0x30] sm:$0xff] %v522_v6  ;;  %v538_v14 = vld [vmem:[%s3206_s6 + $0xe0] sm:$0xff]  ;;  %v540_v15 = vld [vmem:[%s3206_s6 + $0xf0] sm:$0xff] }
  0x33   : > { %525 = vst [vmem:[%s445_s12 + $0x38] sm:$0xff] %v524_v7 }
  0x34   : > { %527 = vst [vmem:[%s445_s12 + $0x40] sm:$0xff] %v526_v8 }
  0x35   : > { %529 = vst [vmem:[%s445_s12 + $0x48] sm:$0xff] %v528_v9 }
  0x36   : > { %531 = vst [vmem:[%s445_s12 + $0x50] sm:$0xff] %v530_v10 }
  0x37   : > { %533 = vst [vmem:[%s445_s12 + $0x58] sm:$0xff] %v532_v11 }
  0x38   : > { %535 = vst [vmem:[%s445_s12 + $0x60] sm:$0xff] %v534_v12 }
  0x39   : > { %537 = vst [vmem:[%s445_s12 + $0x68] sm:$0xff] %v536_v13 }
  0x3a   : > { %539 = vst [vmem:[%s445_s12 + $0x70] sm:$0xff] %v538_v14 }
  0x3b   : > { %541 = vst [vmem:[%s445_s12 + $0x78] sm:$0xff] %v540_v15 }
  0x3c PF: > { %559 = sbr.rel (%p3159_p7) target bundleno = 1436 (0x59c), region = 106  ;;  %s562_s14 = sand.u32 (!%p3159_p7), 1, %s3023_s25  }
  0x3d   : > { %s2301_s16 = sshll.u32 (!%p3159_p7), %s562_s14, 7 }
  0x3e   : > { %s3227_s24 = scalar_lea.vmem (!%p3159_p7), [#allocation3], %s2301_s16 }
  0x41   : > { %3010 = dma.done.wait (%p3163_p8), [#allocation5], 16  }
  0x42   : > { %3012 = vsyncadd (%p3163_p8), [#allocation5], 4294967280 }
  0x43   : > { %3014 = dma.done.wait (%p3163_p8), [#allocation7], 2048  }
  0x44   : > { %3016 = vsyncadd (%p3163_p8), [#allocation7], 4294965248 }
  0x45   : > { %3018 = dma.done.wait (%p3163_p8), [#allocation10], 1024  }
  0x46   : > { %3020 = vsyncadd (%p3163_p8), [#allocation10], 4294966272  ;;  %s2306_s25 = sshll.u32 %s3031_s27, 5  ;;  %p2308_p13 = scmp.ne.s32.totalorder %s3031_s27, 0 }
  0x47   : > { %p633_p12 = scmp.lt.s32.totalorder %s2306_s25, 63 }
  0x48   : > { %647 = sbr.rel (%p2308_p13) target bundleno = 94 (0x5e), region = 130 }
  0x49   : > { %s3718_s25 = smov (!%p633_p12, %s2306_s25), 63 }
  0x4a   : > { %s2307_s18 = sshll.u32 %s3718_s25, 2 }
  0x4b   : > { %s3245_s30 = scalar_lea.vmem %s3673_s1, %s2307_s18 }
  0x4d   : > { %v3047_v16 = vmov 0.0  }
  0x4e   : > { %648 = vst [vmem:[#allocation2 + $0x30] sm:$0xff] %v3047_v16 }
  0x4f   : > { %649 = vst [vmem:[#allocation2] sm:$0xff] %v3047_v16 }
  0x50   : > { %650 = vst [vmem:[#allocation2 + $0x58] sm:$0xff] %v3047_v16 }
  0x51   : > { %651 = vst [vmem:[#allocation2 + $0x18] sm:$0xff] %v3047_v16 }
  0x52   : > { %652 = vst [vmem:[#allocation2 + $0x50] sm:$0xff] %v3047_v16 }
  0x53   : > { %653 = vst [vmem:[#allocation2 + $0x68] sm:$0xff] %v3047_v16 }
  0x54   : > { %654 = vst [vmem:[#allocation2 + $0x8] sm:$0xff] %v3047_v16 }
  0x55   : > { %655 = vst [vmem:[#allocation2 + $0x48] sm:$0xff] %v3047_v16 }
  0x56   : > { %656 = vst [vmem:[#allocation2 + $0x40] sm:$0xff] %v3047_v16 }
  0x57   : > { %657 = vst [vmem:[#allocation2 + $0x20] sm:$0xff] %v3047_v16 }
  0x58   : > { %658 = vst [vmem:[#allocation2 + $0x10] sm:$0xff] %v3047_v16 }
  0x59   : > { %659 = vst [vmem:[#allocation2 + $0x38] sm:$0xff] %v3047_v16 }
  0x5a   : > { %660 = vst [vmem:[#allocation2 + $0x60] sm:$0xff] %v3047_v16 }
  0x5b   : > { %661 = vst [vmem:[#allocation2 + $0x70] sm:$0xff] %v3047_v16 }
  0x5c   : > { %662 = vst [vmem:[#allocation2 + $0x78] sm:$0xff] %v3047_v16 }
  0x5d   : > { %663 = vst [vmem:[#allocation2 + $0x28] sm:$0xff] %v3047_v16 }
  0x5e PF: > { %v2626_v17 = vld [vmem:[%s3245_s30 + $0x38] sm:$0xff]  ;;  %v2625_v19 = vld [vmem:[%s3245_s30 + $0x30] sm:$0xff]  ;;  %v2624_v21 = vld [vmem:[%s3245_s30 + $0x28] sm:$0xff]  ;;  %p2437_p0 = scmp.ne.s32.totalorder %s3031_s27, 1 }
  0x5f   : > { %v2634_v18 = vld [vmem:[%s3245_s30 + $0x78] sm:$0xff]  ;;  %904 = vmatpush.bf16.msra.mxu0 %v2626_v17  ;;  %2675 = vmatpush.bf16.msra.mxu2 %v2626_v17  ;;  %v2633_v20 = vld [vmem:[%s3245_s30 + $0x70] sm:$0xff]  ;;  %v2632_v22 = vld [vmem:[%s3245_s30 + $0x68] sm:$0xff]  ;;  %s3704_s25 = sld [smem:[#allocation17_spill]] (!%p2437_p0) }
  0x60   : > { %953 = vmatpush.bf16.msra.mxu1 %v2634_v18  ;;  %2683 = vmatpush.bf16.msra.mxu3 %v2634_v18  ;;  %v2623_v23 = vld [vmem:[%s3245_s30 + $0x20] sm:$0xff]  ;;  %v2622_v25 = vld [vmem:[%s3245_s30 + $0x18] sm:$0xff]  ;;  %v2621_v27 = vld [vmem:[%s3245_s30 + $0x10] sm:$0xff]  ;;  %s3705_s22 = sld [smem:[#allocation19_spill]] (!%p2437_p0) }
  0x61   : > { %v2631_v24 = vld [vmem:[%s3245_s30 + $0x60] sm:$0xff]  ;;  %v2630_v26 = vld [vmem:[%s3245_s30 + $0x58] sm:$0xff]  ;;  %v2629_v28 = vld [vmem:[%s3245_s30 + $0x50] sm:$0xff]  ;;  %s3706_s17 = sld [smem:[#allocation20_spill]] (!%p2437_p0) }
  0x62   : > { %v2620_v29 = vld [vmem:[%s3245_s30 + $0x8] sm:$0xff]  ;;  %v2619_v31 = vld [vmem:[%s3245_s30] sm:$0xff]  ;;  %v2319_v45 = vld [vmem:[%s3227_s24 + $0x10] sm:$0xf]  ;;  %s3707_s8 = sld [smem:[#allocation21_spill]] (!%p2437_p0) }
  0x63   : > { %905 = vmatpush.bf16.msra.mxu0 %v2625_v19  ;;  %2676 = vmatpush.bf16.msra.mxu2 %v2625_v19  ;;  %v2628_v30 = vld [vmem:[%s3245_s30 + $0x48] sm:$0xff]  ;;  %v2627_v32 = vld [vmem:[%s3245_s30 + $0x40] sm:$0xff]  ;;  %v2606_v46 = vld [vmem:[%s3227_s24 + $0x14] sm:$0xf0]  ;;  %s3703_s30 = sld [smem:[#allocation16_spill]] (!%p2437_p0) }
  0x64   : > { %954 = vmatpush.bf16.msra.mxu1 %v2633_v20  ;;  %2684 = vmatpush.bf16.msra.mxu3 %v2633_v20  ;;  %v2311_v33 = vld [vmem:[%s3227_s24] sm:$0xf]  ;;  %v2604_v34 = vld [vmem:[%s3227_s24 + $0x4] sm:$0xf0]  ;;  %v2603_v37 = vld [vmem:[%s3227_s24 + $0x4] sm:$0xf]  ;;  %v2320_v53 = vor.u32 %v2606_v46, %v2319_v45 }
  0x65   : > { %v2343_v35 = vld [vmem:[%s3227_s24 + $0x40] sm:$0xf]  ;;  %v2612_v36 = vld [vmem:[%s3227_s24 + $0x44] sm:$0xf0]  ;;  %v2313_v38 = vld [vmem:[%s3227_s24 + $0x8] sm:$0xf0]  ;;  %v2312_v41 = vor.u32 %v2604_v34, %v2311_v33 }
  0x66   : > { %v2611_v39 = vld [vmem:[%s3227_s24 + $0x44] sm:$0xf]  ;;  %v2345_v40 = vld [vmem:[%s3227_s24 + $0x48] sm:$0xf0]  ;;  %v2344_v42 = vor.u32 %v2612_v36, %v2343_v35  ;;  %v2316_v43 = vor.u32 %v2603_v37, %v2313_v38  ;;  %v2351_v47 = vld [vmem:[%s3227_s24 + $0x50] sm:$0xf] }
  0x67   : > { %906 = vmatpush.bf16.msra.mxu0 %v2624_v21  ;;  %2677 = vmatpush.bf16.msra.mxu2 %v2624_v21  ;;  %v2348_v44 = vor.u32 %v2611_v39, %v2345_v40  ;;  %v2614_v48 = vld [vmem:[%s3227_s24 + $0x54] sm:$0xf0]  ;;  %v2605_v49 = vld [vmem:[%s3227_s24 + $0x14] sm:$0xf]  ;;  %v2321_v50 = vld [vmem:[%s3227_s24 + $0x18] sm:$0xf0] }
  0x68   : > { %955 = vmatpush.bf16.msra.mxu1 %v2632_v22  ;;  %2685 = vmatpush.bf16.msra.mxu3 %v2632_v22  ;;  %v2613_v51 = vld [vmem:[%s3227_s24 + $0x54] sm:$0xf]  ;;  %v2353_v52 = vld [vmem:[%s3227_s24 + $0x58] sm:$0xf0]  ;;  %v2352_v54 = vor.u32 %v2614_v48, %v2351_v47  ;;  %v2324_v55 = vor.u32 %v2605_v49, %v2321_v50  ;;  %v2327_v57 = vld [vmem:[%s3227_s24 + $0x20] sm:$0xf] }
  0x69   : > { %v2356_v56 = vor.u32 %v2613_v51, %v2353_v52  ;;  %v2608_v58 = vld [vmem:[%s3227_s24 + $0x24] sm:$0xf0]  ;;  %v2359_v59 = vld [vmem:[%s3227_s24 + $0x60] sm:$0xf]  ;;  %v2607_v61 = vld [vmem:[%s3227_s24 + $0x24] sm:$0xf] }
  0x6a   : > { %v2616_v60 = vld [vmem:[%s3227_s24 + $0x64] sm:$0xf0]  ;;  %v2329_v62 = vld [vmem:[%s3227_s24 + $0x28] sm:$0xf0]  ;;  %v2615_v63 = vld [vmem:[%s3227_s24 + $0x64] sm:$0xf]  ;;  %v2328_v1 = vor.u32 %v2608_v58, %v2327_v57 }
  0x6b   : > { %907 = vmatpush.bf16.msra.mxu0 %v2623_v23  ;;  %2678 = vmatpush.bf16.msra.mxu2 %v2623_v23  ;;  %v2361_v0 = vld [vmem:[%s3227_s24 + $0x68] sm:$0xf0]  ;;  %v2360_v2 = vor.u32 %v2616_v60, %v2359_v59  ;;  %v2332_v3 = vor.u32 %v2607_v61, %v2329_v62  ;;  %v2335_v5 = vld [vmem:[%s3227_s24 + $0x30] sm:$0xf]  ;;  %v2610_v6 = vld [vmem:[%s3227_s24 + $0x34] sm:$0xf0] }
  0x6c   : > { %956 = vmatpush.bf16.msra.mxu1 %v2631_v24  ;;  %2686 = vmatpush.bf16.msra.mxu3 %v2631_v24  ;;  %v2364_v4 = vor.u32 %v2615_v63, %v2361_v0  ;;  %v2367_v7 = vld [vmem:[%s3227_s24 + $0x70] sm:$0xf]  ;;  %v2618_v8 = vld [vmem:[%s3227_s24 + $0x74] sm:$0xf0]  ;;  %v2609_v9 = vld [vmem:[%s3227_s24 + $0x34] sm:$0xf]  ;;  %v2336_v13 = vor.u32 %v2610_v6, %v2335_v5 }
  0x6d   : > { %v2337_v10 = vld [vmem:[%s3227_s24 + $0x38] sm:$0xf0]  ;;  %v2617_v11 = vld [vmem:[%s3227_s24 + $0x74] sm:$0xf]  ;;  %v2368_v14 = vor.u32 %v2618_v8, %v2367_v7  ;;  %v672_v23 = vld [vmem:[#allocation2 + $0x40] sm:$0xff]  ;;  %s3708_s10 = sld [smem:[#allocation22_spill]] (!%p2437_p0) }
  0x6e   : > { %v2369_v12 = vld [vmem:[%s3227_s24 + $0x78] sm:$0xf0]  ;;  %v2340_v15 = vor.u32 %v2609_v9, %v2337_v10  ;;  %v664_v18 = vld [vmem:[#allocation2 + $0x30] sm:$0xff]  ;;  %v673_v33 = vld [vmem:[#allocation2 + $0x20] sm:$0xff] }
  0x6f   : > { %908 = vmatpush.bf16.msra.mxu0 %v2622_v25  ;;  %2679 = vmatpush.bf16.msra.mxu2 %v2622_v25  ;;  %v2372_v16 = vor.u32 %v2617_v11, %v2369_v12  ;;  %v666_v37 = vld [vmem:[#allocation2 + $0x58] sm:$0xff]  ;;  %v668_v57 = vld [vmem:[#allocation2 + $0x50] sm:$0xff]  ;;  %v676_v63 = vld [vmem:[#allocation2 + $0x60] sm:$0xff] }
  0x70   : > { %957 = vmatpush.bf16.msra.mxu1 %v2630_v26  ;;  %2687 = vmatpush.bf16.msra.mxu3 %v2630_v26  ;;  %v667_v47 = vld [vmem:[#allocation2 + $0x18] sm:$0xff]  ;;  %v677_v9 = vld [vmem:[#allocation2 + $0x70] sm:$0xff] }
  0x73   : > { %909 = vmatpush.bf16.msra.mxu0 %v2621_v27  ;;  %2680 = vmatpush.bf16.msra.mxu2 %v2621_v27  ;;  %v665_v27 = vld [vmem:[#allocation2] sm:$0xff] }
  0x74   : > { %958 = vmatpush.bf16.msra.mxu1 %v2629_v28  ;;  %2688 = vmatpush.bf16.msra.mxu3 %v2629_v28 }
  0x77   : > { %910 = vmatpush.bf16.msra.mxu0 %v2620_v29  ;;  %2681 = vmatpush.bf16.msra.mxu2 %v2620_v29 }
  0x78   : > { %959 = vmatpush.bf16.msra.mxu1 %v2628_v30  ;;  %2689 = vmatpush.bf16.msra.mxu3 %v2628_v30 }
  0x7b   : > { %911 = vmatpush.bf16.msra.mxu0 %v2619_v31  ;;  %2682 = vmatpush.bf16.msra.mxu2 %v2619_v31 }
  0x7c   : > { %960 = vmatpush.bf16.msra.mxu1 %v2627_v32  ;;  %2690 = vmatpush.bf16.msra.mxu3 %v2627_v32 }
  0x7e   : > { %912 = vmatmul.bf16.vlgmr.msra.gmra.mxu0 %v2312_v41  ;;  %932 = vmatmul.bf16.vlgmr.msra.gmra.mxu2 %v2344_v42 }
  0x7f   : > { %961 = vmatmul.bf16.vlgmr.msra.gmra.mxu1 %v2316_v43  ;;  %981 = vmatmul.bf16.vlgmr.msra.gmra.mxu3 %v2348_v44  ;;  %v674_v43 = vld [vmem:[#allocation2 + $0x10] sm:$0xff] }
  0x8e   : > { %917 = vmatmul.bf16.gmra.mxu0 %v2320_v53  ;;  %937 = vmatmul.bf16.gmra.mxu2 %v2352_v54  ;;  %v675_v53 = vld [vmem:[#allocation2 + $0x38] sm:$0xff] }
  0x8f   : > { %966 = vmatmul.bf16.gmra.mxu1 %v2324_v55  ;;  %986 = vmatmul.bf16.gmra.mxu3 %v2356_v56 }
  0x9e   : > { %922 = vmatmul.bf16.gmra.mxu0 %v2328_v1  ;;  %942 = vmatmul.bf16.gmra.mxu2 %v2360_v2 }
  0x9f   : > { %971 = vmatmul.bf16.gmra.mxu1 %v2332_v3  ;;  %991 = vmatmul.bf16.gmra.mxu3 %v2364_v4  ;;  %v669_v3 = vld [vmem:[#allocation2 + $0x68] sm:$0xff] }
  0xae   : > { %927 = vmatmul.bf16.gmra.mxu0 %v2336_v13  ;;  %947 = vmatmul.bf16.gmra.mxu2 %v2368_v14  ;;  %v670_v13 = vld [vmem:[#allocation2 + $0x8] sm:$0xff] }
  0xaf   : > { %976 = vmatmul.bf16.gmra.mxu1 %v2340_v15  ;;  %996 = vmatmul.bf16.gmra.mxu3 %v2372_v16 }
  0xfb   : > { %v913_v17 = vpop.f32.mrf.mxu0 }
  0xfc   : > { %v962_v19 = vpop.f32.mrf.mxu1 }
  0xfd   : > { %v963_v20 = vadd.f32 %v962_v19, %v913_v17  ;;  %v678_v19 = vld [vmem:[#allocation2 + $0x78] sm:$0xff] }
  0xff   : > { %v1002_v21 = vadd.f32 %v963_v20, %v664_v18 }
 0x101   : > { %1018 = vst [vmem:[#allocation2 + $0x30] sm:$0xff] %v1002_v21  ;;  %v933_v22 = vpop.f32.mrf.mxu2 }
 0x102   : > { %v982_v24 = vpop.f32.mrf.mxu3 }
 0x103   : > { %v983_v25 = vadd.f32 %v982_v24, %v933_v22  ;;  %v915_v26 = vpop.f32.mrf.mxu0 }
 0x104   : > { %v964_v28 = vpop.f32.mrf.mxu1 }
 0x105   : > { %v1010_v29 = vadd.f32 %v983_v25, %v672_v23  ;;  %v965_v30 = vadd.f32 %v964_v28, %v915_v26  ;;  %v671_v23 = vld [vmem:[#allocation2 + $0x48] sm:$0xff] }
 0x107   : > { %1026 = vst [vmem:[#allocation2 + $0x40] sm:$0xff] %v1010_v29  ;;  %v1003_v31 = vadd.f32 %v965_v30, %v665_v27  ;;  %v679_v29 = vld [vmem:[#allocation2 + $0x28] sm:$0xff] }
 0x109   : > { %1019 = vst [vmem:[#allocation2] sm:$0xff] %v1003_v31  ;;  %v935_v32 = vpop.f32.mrf.mxu2 }
 0x10a   : > { %v984_v34 = vpop.f32.mrf.mxu3 }
 0x10b   : > { %v985_v35 = vadd.f32 %v984_v34, %v935_v32  ;;  %v918_v36 = vpop.f32.mrf.mxu0 }
 0x10c   : > { %v967_v38 = vpop.f32.mrf.mxu1 }
 0x10d   : > { %v1011_v39 = vadd.f32 %v985_v35, %v673_v33  ;;  %v968_v40 = vadd.f32 %v967_v38, %v918_v36 }
 0x10f   : > { %1027 = vst [vmem:[#allocation2 + $0x20] sm:$0xff] %v1011_v39  ;;  %v1004_v41 = vadd.f32 %v968_v40, %v666_v37 }
 0x111   : > { %1020 = vst [vmem:[#allocation2 + $0x58] sm:$0xff] %v1004_v41  ;;  %v938_v42 = vpop.f32.mrf.mxu2 }
 0x112   : > { %v987_v44 = vpop.f32.mrf.mxu3 }
 0x113   : > { %v988_v45 = vadd.f32 %v987_v44, %v938_v42  ;;  %v920_v46 = vpop.f32.mrf.mxu0 }
 0x114   : > { %v969_v48 = vpop.f32.mrf.mxu1 }
 0x115   : > { %v1012_v49 = vadd.f32 %v988_v45, %v674_v43  ;;  %v970_v50 = vadd.f32 %v969_v48, %v920_v46 }
 0x117   : > { %1028 = vst [vmem:[#allocation2 + $0x10] sm:$0xff] %v1012_v49  ;;  %v1005_v51 = vadd.f32 %v970_v50, %v667_v47 }
 0x119   : > { %1021 = vst [vmem:[#allocation2 + $0x18] sm:$0xff] %v1005_v51  ;;  %v940_v52 = vpop.f32.mrf.mxu2 }
 0x11a   : > { %v989_v54 = vpop.f32.mrf.mxu3 }
 0x11b   : > { %v990_v55 = vadd.f32 %v989_v54, %v940_v52  ;;  %v923_v56 = vpop.f32.mrf.mxu0 }
 0x11c   : > { %v972_v58 = vpop.f32.mrf.mxu1 }
 0x11d   : > { %v1013_v59 = vadd.f32 %v990_v55, %v675_v53  ;;  %v973_v60 = vadd.f32 %v972_v58, %v923_v56 }
 0x11f   : > { %1029 = vst [vmem:[#allocation2 + $0x38] sm:$0xff] %v1013_v59  ;;  %v1006_v61 = vadd.f32 %v973_v60, %v668_v57 }
 0x121   : > { %1022 = vst [vmem:[#allocation2 + $0x50] sm:$0xff] %v1006_v61  ;;  %v943_v62 = vpop.f32.mrf.mxu2 }
 0x122   : > { %v992_v0 = vpop.f32.mrf.mxu3 }
 0x123   : > { %v993_v1 = vadd.f32 %v992_v0, %v943_v62  ;;  %v925_v2 = vpop.f32.mrf.mxu0 }
 0x124   : > { %v974_v4 = vpop.f32.mrf.mxu1 }
 0x125   : > { %v1014_v5 = vadd.f32 %v993_v1, %v676_v63  ;;  %v975_v6 = vadd.f32 %v974_v4, %v925_v2 }
 0x127   : > { %1030 = vst [vmem:[#allocation2 + $0x60] sm:$0xff] %v1014_v5  ;;  %v1007_v7 = vadd.f32 %v975_v6, %v669_v3 }
 0x129   : > { %1023 = vst [vmem:[#allocation2 + $0x68] sm:$0xff] %v1007_v7  ;;  %v945_v8 = vpop.f32.mrf.mxu2 }
 0x12a   : > { %v994_v10 = vpop.f32.mrf.mxu3 }
 0x12b   : > { %v995_v11 = vadd.f32 %v994_v10, %v945_v8  ;;  %v928_v12 = vpop.f32.mrf.mxu0 }
 0x12c   : > { %v977_v14 = vpop.f32.mrf.mxu1 }
 0x12d   : > { %v1015_v15 = vadd.f32 %v995_v11, %v677_v9  ;;  %v978_v16 = vadd.f32 %v977_v14, %v928_v12 }
 0x12f   : > { %1031 = vst [vmem:[#allocation2 + $0x70] sm:$0xff] %v1015_v15  ;;  %v1008_v17 = vadd.f32 %v978_v16, %v670_v13 }
 0x131   : > { %1024 = vst [vmem:[#allocation2 + $0x8] sm:$0xff] %v1008_v17  ;;  %v948_v18 = vpop.f32.mrf.mxu2 }
 0x132   : > { %v997_v20 = vpop.f32.mrf.mxu3 }
 0x133   : > { %v998_v21 = vadd.f32 %v997_v20, %v948_v18  ;;  %v930_v22 = vpop.f32.mrf.mxu0 }
 0x134   : > { %v979_v24 = vpop.f32.mrf.mxu1 }
 0x135   : > { %v1016_v25 = vadd.f32 %v998_v21, %v678_v19  ;;  %v980_v26 = vadd.f32 %v979_v24, %v930_v22 }
 0x137   : > { %1032 = vst [vmem:[#allocation2 + $0x78] sm:$0xff] %v1016_v25  ;;  %v1009_v27 = vadd.f32 %v980_v26, %v671_v23 }
 0x139   : > { %1025 = vst [vmem:[#allocation2 + $0x48] sm:$0xff] %v1009_v27  ;;  %v950_v28 = vpop.f32.mrf.mxu2 }
 0x13a   : > { %v999_v30 = vpop.f32.mrf.mxu3 }
 0x13b   : > { %v1000_v31 = vadd.f32 %v999_v30, %v950_v28  ;;  %1037 = sbr.rel (%p2437_p0) target bundleno = 1436 (0x59c), region = 134 }
 0x13d   : > { %v1017_v32 = vadd.f32 %v1000_v31, %v679_v29 }
 0x13f   : > { %1033 = vst [vmem:[#allocation2 + $0x28] sm:$0xff] %v1017_v32 }
 0x140   : > { %v2642_v33 = vld [vmem:[%s3675_s3 + $0x38] sm:$0xff]  ;;  %v2641_v34 = vld [vmem:[%s3675_s3 + $0x30] sm:$0xff]  ;;  %v2640_v35 = vld [vmem:[%s3675_s3 + $0x28] sm:$0xff] }
 0x141   : > { %1166 = vmatpush.bf16.msra.mxu0 %v2642_v33  ;;  %2691 = vmatpush.bf16.msra.mxu1 %v2642_v33  ;;  %v2639_v36 = vld [vmem:[%s3675_s3 + $0x20] sm:$0xff]  ;;  %v2638_v37 = vld [vmem:[%s3675_s3 + $0x18] sm:$0xff]  ;;  %v2637_v39 = vld [vmem:[%s3675_s3 + $0x10] sm:$0xff] }
 0x142   : > { %2692 = vmatpush.bf16.msra.mxu2 %v2642_v33  ;;  %2693 = vmatpush.bf16.msra.mxu3 %v2642_v33  ;;  %v3315_v38 = vld [vmem:[%s3674_s2] ss:$0 sm:$0xff]  ;;  %v1038_v40 = vld [vmem:[#allocation2 + $0x30] sm:$0xff]  ;;  %v1043_v43 = vld [vmem:[#allocation2 + $0x68] sm:$0xff] }
 0x143   : > { %v1039_v41 = vld [vmem:[#allocation2] sm:$0xff]  ;;  %v1042_v42 = vld [vmem:[#allocation2 + $0x50] sm:$0xff]  ;;  %v1058_v47 = vadd.f32 %v3315_v38, %v1038_v40  ;;  %v1063_v51 = vadd.f32 %v3315_v38, %v1043_v43  ;;  %v2636_v53 = vld [vmem:[%s3675_s3 + $0x8] sm:$0xff] }
 0x144   : > { %v1046_v44 = vld [vmem:[#allocation2 + $0x40] sm:$0xff]  ;;  %v1051_v48 = vld [vmem:[#allocation2 + $0x70] sm:$0xff]  ;;  %v1059_v49 = vadd.f32 %v3315_v38, %v1039_v41  ;;  %v1062_v50 = vadd.f32 %v3315_v38, %v1042_v42  ;;  %v2650_v2 = vld [vmem:[%s3703_s30 + $0x38] sm:$0xff] }
 0x145   : > { %1167 = vmatpush.bf16.msra.mxu0 %v2641_v34  ;;  %2694 = vmatpush.bf16.msra.mxu1 %v2641_v34  ;;  %v1047_v45 = vld [vmem:[#allocation2 + $0x20] sm:$0xff]  ;;  %v1066_v52 = vadd.f32 %v3315_v38, %v1046_v44  ;;  %v1071_v56 = vadd.f32 %v3315_v38, %v1051_v48  ;;  %v1074_v57 = vmax.f32 %v1058_v47, 0.0  ;;  %v1079_v60 = vmax.f32 %v1063_v51, 0.0  ;;  %v2649_v7 = vld [vmem:[%s3703_s30 + $0x30] sm:$0xff]  ;;  %v1040_v8 = vld [vmem:[#allocation2 + $0x58] sm:$0xff] }
 0x146   : > { %2695 = vmatpush.bf16.msra.mxu2 %v2641_v34  ;;  %2696 = vmatpush.bf16.msra.mxu3 %v2641_v34  ;;  %v1050_v46 = vld [vmem:[#allocation2 + $0x60] sm:$0xff]  ;;  %v1067_v54 = vadd.f32 %v3315_v38, %v1047_v45  ;;  %v1075_v58 = vmax.f32 %v1059_v49, 0.0  ;;  %v1078_v59 = vmax.f32 %v1062_v50, 0.0  ;;  %v1041_v9 = vld [vmem:[#allocation2 + $0x18] sm:$0xff]  ;;  %v1044_v10 = vld [vmem:[#allocation2 + $0x8] sm:$0xff]  ;;  %v1060_v17 = vadd.f32 %v3315_v38, %v1040_v8 }
 0x147   : > { %v1070_v55 = vadd.f32 %v3315_v38, %v1050_v46  ;;  %v2635_v61 = vld [vmem:[%s3675_s3] sm:$0xff]  ;;  %v1082_v62 = vmax.f32 %v1066_v52, 0.0  ;;  %v1087_v1 = vmax.f32 %v1071_v56, 0.0  ;;  %v1045_v11 = vld [vmem:[#allocation2 + $0x48] sm:$0xff]  ;;  %v1048_v12 = vld [vmem:[#allocation2 + $0x10] sm:$0xff]  ;;  %v1061_v18 = vadd.f32 %v3315_v38, %v1041_v9 }
 0x148   : > { %v1083_v63 = vmax.f32 %v1067_v54, 0.0  ;;  %v1090_v3 = vpack.c.bf16 %v1075_v58, %v1074_v57  ;;  %v1092_v4 = vpack.c.bf16 %v1079_v60, %v1078_v59  ;;  %v1049_v13 = vld [vmem:[#allocation2 + $0x38] sm:$0xff]  ;;  %v1053_v15 = vld [vmem:[#allocation2 + $0x28] sm:$0xff]  ;;  %v1064_v19 = vadd.f32 %v3315_v38, %v1044_v10  ;;  %v2647_v25 = vld [vmem:[%s3703_s30 + $0x20] sm:$0xff] }
 0x149   : > { %1168 = vmatpush.bf16.msra.mxu0 %v2640_v35  ;;  %2697 = vmatpush.bf16.msra.mxu1 %v2640_v35  ;;  %v1086_v0 = vmax.f32 %v1070_v55, 0.0  ;;  %v1052_v14 = vld [vmem:[#allocation2 + $0x78] sm:$0xff]  ;;  %v2648_v16 = vld [vmem:[%s3703_s30 + $0x28] sm:$0xff]  ;;  %v1065_v20 = vadd.f32 %v3315_v38, %v1045_v11  ;;  %v1068_v21 = vadd.f32 %v3315_v38, %v1048_v12  ;;  %v1069_v22 = vadd.f32 %v3315_v38, %v1049_v13  ;;  %v2643_v41 = vld [vmem:[%s3703_s30] sm:$0xff] }
 0x14a   : > { %2698 = vmatpush.bf16.msra.mxu2 %v2640_v35  ;;  %2699 = vmatpush.bf16.msra.mxu3 %v2640_v35  ;;  %v1094_v5 = vpack.c.bf16 %v1083_v63, %v1082_v62  ;;  %v1072_v23 = vadd.f32 %v3315_v38, %v1052_v14  ;;  %v1073_v24 = vadd.f32 %v3315_v38, %v1053_v15  ;;  %v1076_v26 = vmax.f32 %v1060_v17, 0.0  ;;  %v2646_v34 = vld [vmem:[%s3703_s30 + $0x18] sm:$0xff]  ;;  %v2644_v40 = vld [vmem:[%s3703_s30 + $0x8] sm:$0xff]  ;;  %v3366_v43 = vld [vmem:[#allocation4] ss:$0 sm:$0xff] }
 0x14b   : > { %v1096_v6 = vpack.c.bf16 %v1087_v1, %v1086_v0  ;;  %v1077_v27 = vmax.f32 %v1061_v18, 0.0  ;;  %v1080_v28 = vmax.f32 %v1064_v19, 0.0  ;;  %v1081_v29 = vmax.f32 %v1065_v20, 0.0  ;;  %v2658_v15 = vld [vmem:[#allocation6 + $0x38] sm:$0xff] }
 0x14c   : > { %v1084_v30 = vmax.f32 %v1068_v21, 0.0  ;;  %v1085_v31 = vmax.f32 %v1069_v22, 0.0  ;;  %v1088_v32 = vmax.f32 %v1072_v23, 0.0  ;;  %v1089_v33 = vmax.f32 %v1073_v24, 0.0  ;;  %v2657_v24 = vld [vmem:[#allocation6 + $0x30] sm:$0xff] }
 0x14d   : > { %1169 = vmatpush.bf16.msra.mxu0 %v2639_v36  ;;  %2700 = vmatpush.bf16.msra.mxu1 %v2639_v36  ;;  %v1091_v35 = vpack.c.bf16 %v1077_v27, %v1076_v26  ;;  %v2655_v26 = vld [vmem:[#allocation6 + $0x20] sm:$0xff] }
 0x14e   : > { %2701 = vmatpush.bf16.msra.mxu2 %v2639_v36  ;;  %2702 = vmatpush.bf16.msra.mxu3 %v2639_v36  ;;  %v1093_v36 = vpack.c.bf16 %v1081_v29, %v1080_v28  ;;  %v1097_v38 = vpack.c.bf16 %v1089_v33, %v1088_v32 }
 0x151   : > { %1170 = vmatpush.bf16.msra.mxu0 %v2638_v37  ;;  %2703 = vmatpush.bf16.msra.mxu1 %v2638_v37 }
 0x152   : > { %2704 = vmatpush.bf16.msra.mxu2 %v2638_v37  ;;  %2705 = vmatpush.bf16.msra.mxu3 %v2638_v37  ;;  %v1095_v37 = vpack.c.bf16 %v1085_v31, %v1084_v30  ;;  %v2654_v30 = vld [vmem:[#allocation6 + $0x18] sm:$0xff] }
 0x155   : > { %1171 = vmatpush.bf16.msra.mxu0 %v2637_v39  ;;  %2706 = vmatpush.bf16.msra.mxu1 %v2637_v39 }
 0x156   : > { %2707 = vmatpush.bf16.msra.mxu2 %v2637_v39  ;;  %2708 = vmatpush.bf16.msra.mxu3 %v2637_v39  ;;  %v2645_v39 = vld [vmem:[%s3703_s30 + $0x10] sm:$0xff] }
 0x159   : > { %1172 = vmatpush.bf16.msra.mxu0 %v2636_v53  ;;  %2709 = vmatpush.bf16.msra.mxu1 %v2636_v53 }
 0x15a   : > { %2710 = vmatpush.bf16.msra.mxu2 %v2636_v53  ;;  %2711 = vmatpush.bf16.msra.mxu3 %v2636_v53 }
 0x15d   : > { %1173 = vmatpush.bf16.msra.mxu0 %v2635_v61  ;;  %2712 = vmatpush.bf16.msra.mxu1 %v2635_v61 }
 0x15e   : > { %2713 = vmatpush.bf16.msra.mxu2 %v2635_v61  ;;  %2714 = vmatpush.bf16.msra.mxu3 %v2635_v61 }
 0x160   : > { %1174 = vmatmul.bf16.vlgmr.msra.gmra.mxu0 %v1090_v3  ;;  %1184 = vmatmul.bf16.vlgmr.msra.gmra.mxu1 %v1092_v4 }
 0x161   : > { %1307 = vmatpush.bf16.msrb.mxu1 %v2650_v2  ;;  %1194 = vmatmul.bf16.vlgmr.msra.gmra.mxu2 %v1094_v5 }
 0x162   : > { %1204 = vmatmul.bf16.vlgmr.msra.gmra.mxu3 %v1096_v6  ;;  %1448 = vmatpush.bf16.msrb.mxu2 %v2658_v15 }
 0x165   : > { %1308 = vmatpush.bf16.msrb.mxu1 %v2649_v7 }
 0x166   : > { %1449 = vmatpush.bf16.msrb.mxu2 %v2657_v24  ;;  %v2665_v24 = vld [vmem:[#allocation8 + $0x30] sm:$0xff] }
 0x169   : > { %1309 = vmatpush.bf16.msrb.mxu1 %v2648_v16 }
 0x16d   : > { %1310 = vmatpush.bf16.msrb.mxu1 %v2647_v25  ;;  %v2656_v25 = vld [vmem:[#allocation6 + $0x28] sm:$0xff] }
 0x16e   : > { %1450 = vmatpush.bf16.msrb.mxu2 %v2656_v25  ;;  %v2664_v25 = vld [vmem:[#allocation8 + $0x28] sm:$0xff] }
 0x170   : > { %1179 = vmatmul.bf16.gmra.mxu0 %v1091_v35  ;;  %1189 = vmatmul.bf16.gmra.mxu1 %v1093_v36  ;;  %v2652_v35 = vld [vmem:[#allocation6 + $0x8] sm:$0xff] }
 0x171   : > { %1311 = vmatpush.bf16.msrb.mxu1 %v2646_v34  ;;  %1199 = vmatmul.bf16.gmra.mxu2 %v1095_v37  ;;  %v2653_v34 = vld [vmem:[#allocation6 + $0x10] sm:$0xff] }
 0x172   : > { %1209 = vmatmul.bf16.gmra.mxu3 %v1097_v38  ;;  %1451 = vmatpush.bf16.msrb.mxu2 %v2655_v26 }
 0x175   : > { %1312 = vmatpush.bf16.msrb.mxu1 %v2645_v39  ;;  %v2651_v39 = vld [vmem:[#allocation6] sm:$0xff] }
 0x176   : > { %1452 = vmatpush.bf16.msrb.mxu2 %v2654_v30 }
 0x179   : > { %1313 = vmatpush.bf16.msrb.mxu1 %v2644_v40 }
 0x17a   : > { %1453 = vmatpush.bf16.msrb.mxu2 %v2653_v34 }
 0x17d   : > { %1314 = vmatpush.bf16.msrb.mxu1 %v2643_v41 }
 0x17e   : > { %1454 = vmatpush.bf16.msrb.mxu2 %v2652_v35  ;;  %v2661_v35 = vld [vmem:[#allocation8 + $0x10] sm:$0xff] }
 0x182   : > { %1455 = vmatpush.bf16.msrb.mxu2 %v2651_v39 }
 0x1dd   : > { %v1175_v42 = vpop.f32.mrf.mxu0  ;;  %v1185_v51 = vpop.f32.mrf.mxu1 }
 0x1de   : > { %v1176_v44 = vadd.f32 %v3366_v43, %v1175_v42  ;;  %v1186_v59 = vadd.f32 %v3366_v43, %v1185_v51 }
 0x1e0   : > { %v1215_v47 = vmax.f32 %v1176_v44, 0.0  ;;  %v1219_v62 = vmax.f32 %v1186_v59, 0.0 }
 0x1e4   : > { %v1195_v2 = vpop.f32.mrf.mxu2 }
 0x1e5   : > { %v1177_v45 = vpop.f32.mrf.mxu0  ;;  %v1187_v58 = vpop.f32.mrf.mxu1  ;;  %v1196_v9 = vadd.f32 %v3366_v43, %v1195_v2 }
 0x1e6   : > { %v1178_v46 = vadd.f32 %v3366_v43, %v1177_v45  ;;  %v1188_v60 = vadd.f32 %v3366_v43, %v1187_v58  ;;  %v1205_v17 = vpop.f32.mrf.mxu3  ;;  %v3387_v45 = vld [vmem:[%s3704_s25] ss:$0 sm:$0xff] }
 0x1e7   : > { %v1223_v12 = vmax.f32 %v1196_v9, 0.0  ;;  %v1206_v27 = vadd.f32 %v3366_v43, %v1205_v17 }
 0x1e8   : > { %v1216_v48 = vmax.f32 %v1178_v46, 0.0  ;;  %v1220_v63 = vmax.f32 %v1188_v60, 0.0 }
 0x1e9   : > { %v1227_v31 = vmax.f32 %v1206_v27, 0.0 }
 0x1ea   : > { %v1231_v49 = vpack.c.bf16 %v1216_v48, %v1215_v47  ;;  %v1233_v0 = vpack.c.bf16 %v1220_v63, %v1219_v62 }
 0x1ec   : > { %1315 = vmatmul.bf16.vlgmr.msrb.gmra.mxu1 %v1231_v49  ;;  %v1197_v8 = vpop.f32.mrf.mxu2 }
 0x1ed   : > { %v1180_v50 = vpop.f32.mrf.mxu0  ;;  %v1190_v61 = vpop.f32.mrf.mxu1  ;;  %v1198_v10 = vadd.f32 %v3366_v43, %v1197_v8 }
 0x1ee   : > { %v1181_v52 = vadd.f32 %v3366_v43, %v1180_v50  ;;  %v1191_v3 = vadd.f32 %v3366_v43, %v1190_v61  ;;  %v1207_v23 = vpop.f32.mrf.mxu3 }
 0x1ef   : > { %v1224_v13 = vmax.f32 %v1198_v10, 0.0  ;;  %v1208_v28 = vadd.f32 %v3366_v43, %v1207_v23 }
 0x1f0   : > { %v1217_v55 = vmax.f32 %v1181_v52, 0.0  ;;  %v1221_v5 = vmax.f32 %v1191_v3, 0.0 }
 0x1f1   : > { %v1235_v14 = vpack.c.bf16 %v1224_v13, %v1223_v12  ;;  %v1228_v32 = vmax.f32 %v1208_v28, 0.0 }
 0x1f3   : > { %v1237_v33 = vpack.c.bf16 %v1228_v32, %v1227_v31 }
 0x1f4   : > { %v1200_v11 = vpop.f32.mrf.mxu2 }
 0x1f5   : > { %v1182_v53 = vpop.f32.mrf.mxu0  ;;  %v1192_v1 = vpop.f32.mrf.mxu1  ;;  %v1201_v18 = vadd.f32 %v3366_v43, %v1200_v11 }
 0x1f6   : > { %v1183_v54 = vadd.f32 %v3366_v43, %v1182_v53  ;;  %v1193_v4 = vadd.f32 %v3366_v43, %v1192_v1  ;;  %v1210_v29 = vpop.f32.mrf.mxu3 }
 0x1f7   : > { %v1225_v20 = vmax.f32 %v1201_v18, 0.0  ;;  %v1211_v37 = vadd.f32 %v3366_v43, %v1210_v29  ;;  %v2663_v29 = vld [vmem:[#allocation8 + $0x20] sm:$0xff] }
 0x1f8   : > { %v1218_v56 = vmax.f32 %v1183_v54, 0.0  ;;  %v1222_v6 = vmax.f32 %v1193_v4, 0.0 }
 0x1f9   : > { %v1229_v40 = vmax.f32 %v1211_v37, 0.0 }
 0x1fa   : > { %v1232_v57 = vpack.c.bf16 %v1218_v56, %v1217_v55  ;;  %v1234_v7 = vpack.c.bf16 %v1222_v6, %v1221_v5 }
 0x1fc   : > { %1320 = vmatmul.bf16.gmra.mxu1 %v1232_v57  ;;  %v1202_v16 = vpop.f32.mrf.mxu2 }
 0x1fd   : > { %v1203_v19 = vadd.f32 %v3366_v43, %v1202_v16 }
 0x1fe   : > { %v1212_v36 = vpop.f32.mrf.mxu3 }
 0x1ff   : > { %v1226_v21 = vmax.f32 %v1203_v19, 0.0  ;;  %v1213_v38 = vadd.f32 %v3366_v43, %v1212_v36  ;;  %v2660_v36 = vld [vmem:[#allocation8 + $0x8] sm:$0xff] }
 0x201   : > { %v1236_v22 = vpack.c.bf16 %v1226_v21, %v1225_v20  ;;  %v1230_v41 = vmax.f32 %v1213_v38, 0.0 }
 0x203   : > { %v1238_v42 = vpack.c.bf16 %v1230_v41, %v1229_v40 }
 0x20c   : > { %1325 = vmatmul.bf16.gmra.mxu1 %v1233_v0 }
 0x21c   : > { %1330 = vmatmul.bf16.gmra.mxu1 %v1234_v7 }
 0x22c   : > { %1335 = vmatmul.bf16.gmra.mxu1 %v1235_v14 }
 0x23c   : > { %1340 = vmatmul.bf16.gmra.mxu1 %v1236_v22  ;;  %v2666_v22 = vld [vmem:[#allocation8 + $0x38] sm:$0xff] }
 0x23d   : > { %1589 = vmatpush.bf16.msrb.mxu3 %v2666_v22 }
 0x241   : > { %1590 = vmatpush.bf16.msrb.mxu3 %v2665_v24 }
 0x245   : > { %1591 = vmatpush.bf16.msrb.mxu3 %v2664_v25  ;;  %v2673_v25 = vld [vmem:[#allocation9 + $0x30] sm:$0xff] }
 0x249   : > { %1592 = vmatpush.bf16.msrb.mxu3 %v2663_v29 }
 0x24c   : > { %1345 = vmatmul.bf16.gmra.mxu1 %v1237_v33  ;;  %v2662_v33 = vld [vmem:[#allocation8 + $0x18] sm:$0xff] }
 0x24d   : > { %1593 = vmatpush.bf16.msrb.mxu3 %v2662_v33 }
 0x251   : > { %1594 = vmatpush.bf16.msrb.mxu3 %v2661_v35 }
 0x255   : > { %1595 = vmatpush.bf16.msrb.mxu3 %v2660_v36  ;;  %v2669_v36 = vld [vmem:[#allocation9 + $0x10] sm:$0xff] }
 0x25c   : > { %1350 = vmatmul.bf16.gmra.mxu1 %v1238_v42  ;;  %v2659_v42 = vld [vmem:[#allocation8] sm:$0xff] }
 0x25d   : > { %1596 = vmatpush.bf16.msrb.mxu3 %v2659_v42 }
 0x269   : > { %v1316_v44 = vpop.f32.mrf.mxu1 }
 0x26a   : > { %v1317_v46 = vadd.f32 %v3387_v45, %v1316_v44 }
 0x26c   : > { %v1356_v49 = vmax.f32 %v1317_v46, 0.0 }
 0x271   : > { %v1318_v47 = vpop.f32.mrf.mxu1 }
 0x272   : > { %v1319_v48 = vadd.f32 %v3387_v45, %v1318_v47  ;;  %v3408_v47 = vld [vmem:[%s3705_s22] ss:$0 sm:$0xff] }
 0x274   : > { %v1357_v50 = vmax.f32 %v1319_v48, 0.0 }
 0x276   : > { %v1372_v43 = vpack.c.bf16 %v1357_v50, %v1356_v49 }
 0x278   : > { %1456 = vmatmul.bf16.vlgmr.msrb.gmra.mxu2 %v1372_v43 }
 0x279   : > { %v1321_v51 = vpop.f32.mrf.mxu1 }
 0x27a   : > { %v1322_v52 = vadd.f32 %v3387_v45, %v1321_v51 }
 0x27c   : > { %v1358_v55 = vmax.f32 %v1322_v52, 0.0 }
 0x281   : > { %v1323_v53 = vpop.f32.mrf.mxu1 }
 0x282   : > { %v1324_v54 = vadd.f32 %v3387_v45, %v1323_v53 }
 0x284   : > { %v1359_v56 = vmax.f32 %v1324_v54, 0.0 }
 0x286   : > { %v1373_v57 = vpack.c.bf16 %v1359_v56, %v1358_v55 }
 0x288   : > { %1461 = vmatmul.bf16.gmra.mxu2 %v1373_v57 }
 0x289   : > { %v1326_v58 = vpop.f32.mrf.mxu1 }
 0x28a   : > { %v1327_v59 = vadd.f32 %v3387_v45, %v1326_v58 }
 0x28c   : > { %v1360_v62 = vmax.f32 %v1327_v59, 0.0 }
 0x291   : > { %v1328_v60 = vpop.f32.mrf.mxu1 }
 0x292   : > { %v1329_v61 = vadd.f32 %v3387_v45, %v1328_v60 }
 0x294   : > { %v1361_v63 = vmax.f32 %v1329_v61, 0.0 }
 0x296   : > { %v1374_v0 = vpack.c.bf16 %v1361_v63, %v1360_v62 }
 0x298   : > { %1466 = vmatmul.bf16.gmra.mxu2 %v1374_v0 }
 0x299   : > { %v1331_v1 = vpop.f32.mrf.mxu1 }
 0x29a   : > { %v1332_v2 = vadd.f32 %v3387_v45, %v1331_v1 }
 0x29c   : > { %v1362_v5 = vmax.f32 %v1332_v2, 0.0 }
 0x2a1   : > { %v1333_v3 = vpop.f32.mrf.mxu1 }
 0x2a2   : > { %v1334_v4 = vadd.f32 %v3387_v45, %v1333_v3 }
 0x2a4   : > { %v1363_v6 = vmax.f32 %v1334_v4, 0.0 }
 0x2a6   : > { %v1375_v7 = vpack.c.bf16 %v1363_v6, %v1362_v5 }
 0x2a8   : > { %1471 = vmatmul.bf16.gmra.mxu2 %v1375_v7 }
 0x2a9   : > { %v1336_v8 = vpop.f32.mrf.mxu1 }
 0x2aa   : > { %v1337_v9 = vadd.f32 %v3387_v45, %v1336_v8 }
 0x2ac   : > { %v1364_v12 = vmax.f32 %v1337_v9, 0.0 }
 0x2b1   : > { %v1338_v10 = vpop.f32.mrf.mxu1 }
 0x2b2   : > { %v1339_v11 = vadd.f32 %v3387_v45, %v1338_v10 }
 0x2b4   : > { %v1365_v13 = vmax.f32 %v1339_v11, 0.0 }
 0x2b6   : > { %v1376_v14 = vpack.c.bf16 %v1365_v13, %v1364_v12 }
 0x2b8   : > { %1476 = vmatmul.bf16.gmra.mxu2 %v1376_v14 }
 0x2b9   : > { %v1341_v15 = vpop.f32.mrf.mxu1 }
 0x2ba   : > { %v1342_v16 = vadd.f32 %v3387_v45, %v1341_v15 }
 0x2bc   : > { %v1366_v19 = vmax.f32 %v1342_v16, 0.0 }
 0x2c1   : > { %v1343_v17 = vpop.f32.mrf.mxu1 }
 0x2c2   : > { %v1344_v18 = vadd.f32 %v3387_v45, %v1343_v17 }
 0x2c4   : > { %v1367_v20 = vmax.f32 %v1344_v18, 0.0 }
 0x2c6   : > { %v1377_v21 = vpack.c.bf16 %v1367_v20, %v1366_v19 }
 0x2c8   : > { %1481 = vmatmul.bf16.gmra.mxu2 %v1377_v21 }
 0x2c9   : > { %v1346_v23 = vpop.f32.mrf.mxu1 }
 0x2ca   : > { %v1347_v26 = vadd.f32 %v3387_v45, %v1346_v23  ;;  %v2674_v23 = vld [vmem:[#allocation9 + $0x38] sm:$0xff] }
 0x2cb   : > { %1730 = vmatpush.bf16.msrb.mxu0 %v2674_v23 }
 0x2cc   : > { %v1368_v30 = vmax.f32 %v1347_v26, 0.0  ;;  %v2672_v26 = vld [vmem:[#allocation9 + $0x28] sm:$0xff] }
 0x2cf   : > { %1731 = vmatpush.bf16.msrb.mxu0 %v2673_v25 }
 0x2d1   : > { %v1348_v27 = vpop.f32.mrf.mxu1 }
 0x2d2   : > { %v1349_v28 = vadd.f32 %v3387_v45, %v1348_v27 }
 0x2d3   : > { %1732 = vmatpush.bf16.msrb.mxu0 %v2672_v26 }
 0x2d4   : > { %v1369_v31 = vmax.f32 %v1349_v28, 0.0 }
 0x2d6   : > { %v1378_v32 = vpack.c.bf16 %v1369_v31, %v1368_v30  ;;  %v2671_v30 = vld [vmem:[#allocation9 + $0x20] sm:$0xff] }
 0x2d7   : > { %1733 = vmatpush.bf16.msrb.mxu0 %v2671_v30 }
 0x2d8   : > { %1486 = vmatmul.bf16.gmra.mxu2 %v1378_v32 }
 0x2d9   : > { %v1351_v34 = vpop.f32.mrf.mxu1 }
 0x2da   : > { %v1352_v37 = vadd.f32 %v3387_v45, %v1351_v34  ;;  %v2670_v34 = vld [vmem:[#allocation9 + $0x18] sm:$0xff] }
 0x2db   : > { %1734 = vmatpush.bf16.msrb.mxu0 %v2670_v34 }
 0x2dc   : > { %v1370_v40 = vmax.f32 %v1352_v37, 0.0  ;;  %v2668_v37 = vld [vmem:[#allocation9 + $0x8] sm:$0xff] }
 0x2df   : > { %1735 = vmatpush.bf16.msrb.mxu0 %v2669_v36 }
 0x2e1   : > { %v1353_v38 = vpop.f32.mrf.mxu1 }
 0x2e2   : > { %v1354_v39 = vadd.f32 %v3387_v45, %v1353_v38 }
 0x2e3   : > { %1736 = vmatpush.bf16.msrb.mxu0 %v2668_v37 }
 0x2e4   : > { %v1371_v41 = vmax.f32 %v1354_v39, 0.0 }
 0x2e6   : > { %v1379_v44 = vpack.c.bf16 %v1371_v41, %v1370_v40 }
 0x2e8   : > { %1491 = vmatmul.bf16.gmra.mxu2 %v1379_v44  ;;  %v2667_v44 = vld [vmem:[#allocation9] sm:$0xff] }
 0x2e9   : > { %1737 = vmatpush.bf16.msrb.mxu0 %v2667_v44 }
 0x2fb   : > { %v1457_v46 = vpop.f32.mrf.mxu2 }
 0x2fc   : > { %v1458_v48 = vadd.f32 %v3408_v47, %v1457_v46 }
 0x2fe   : > { %v1497_v43 = vmax.f32 %v1458_v48, 0.0 }
 0x303   : > { %v1459_v49 = vpop.f32.mrf.mxu2 }
 0x304   : > { %v1460_v50 = vadd.f32 %v3408_v47, %v1459_v49  ;;  %v2803_v49 = vld [vmem:[%s3706_s17] ss:$0 sm:$0xff] }
 0x306   : > { %v1498_v45 = vmax.f32 %v1460_v50, 0.0 }
 0x308   : > { %v1513_v51 = vpack.c.bf16 %v1498_v45, %v1497_v43 }
 0x30a   : > { %1597 = vmatmul.bf16.vlgmr.msrb.gmra.mxu3 %v1513_v51 }
 0x30b   : > { %v1462_v52 = vpop.f32.mrf.mxu2 }
 0x30c   : > { %v1463_v53 = vadd.f32 %v3408_v47, %v1462_v52 }
 0x30e   : > { %v1499_v56 = vmax.f32 %v1463_v53, 0.0 }
 0x313   : > { %v1464_v54 = vpop.f32.mrf.mxu2 }
 0x314   : > { %v1465_v55 = vadd.f32 %v3408_v47, %v1464_v54 }
 0x316   : > { %v1500_v57 = vmax.f32 %v1465_v55, 0.0 }
 0x318   : > { %v1514_v58 = vpack.c.bf16 %v1500_v57, %v1499_v56 }
 0x31a   : > { %1602 = vmatmul.bf16.gmra.mxu3 %v1514_v58 }
 0x31b   : > { %v1467_v59 = vpop.f32.mrf.mxu2 }
 0x31c   : > { %v1468_v60 = vadd.f32 %v3408_v47, %v1467_v59 }
 0x31e   : > { %v1501_v63 = vmax.f32 %v1468_v60, 0.0 }
 0x323   : > { %v1469_v61 = vpop.f32.mrf.mxu2 }
 0x324   : > { %v1470_v62 = vadd.f32 %v3408_v47, %v1469_v61 }
 0x326   : > { %v1502_v0 = vmax.f32 %v1470_v62, 0.0 }
 0x328   : > { %v1515_v1 = vpack.c.bf16 %v1502_v0, %v1501_v63 }
 0x32a   : > { %1607 = vmatmul.bf16.gmra.mxu3 %v1515_v1 }
 0x32b   : > { %v1472_v2 = vpop.f32.mrf.mxu2 }
 0x32c   : > { %v1473_v3 = vadd.f32 %v3408_v47, %v1472_v2 }
 0x32e   : > { %v1503_v6 = vmax.f32 %v1473_v3, 0.0 }
 0x333   : > { %v1474_v4 = vpop.f32.mrf.mxu2 }
 0x334   : > { %v1475_v5 = vadd.f32 %v3408_v47, %v1474_v4 }
 0x336   : > { %v1504_v7 = vmax.f32 %v1475_v5, 0.0 }
 0x338   : > { %v1516_v8 = vpack.c.bf16 %v1504_v7, %v1503_v6 }
 0x33a   : > { %1612 = vmatmul.bf16.gmra.mxu3 %v1516_v8 }
 0x33b   : > { %v1477_v9 = vpop.f32.mrf.mxu2 }
 0x33c   : > { %v1478_v10 = vadd.f32 %v3408_v47, %v1477_v9 }
 0x33e   : > { %v1505_v13 = vmax.f32 %v1478_v10, 0.0 }
 0x343   : > { %v1479_v11 = vpop.f32.mrf.mxu2 }
 0x344   : > { %v1480_v12 = vadd.f32 %v3408_v47, %v1479_v11 }
 0x346   : > { %v1506_v14 = vmax.f32 %v1480_v12, 0.0 }
 0x348   : > { %v1517_v15 = vpack.c.bf16 %v1506_v14, %v1505_v13 }
 0x34a   : > { %1617 = vmatmul.bf16.gmra.mxu3 %v1517_v15 }
 0x34b   : > { %v1482_v16 = vpop.f32.mrf.mxu2 }
 0x34c   : > { %v1483_v17 = vadd.f32 %v3408_v47, %v1482_v16 }
 0x34e   : > { %v1507_v20 = vmax.f32 %v1483_v17, 0.0 }
 0x353   : > { %v1484_v18 = vpop.f32.mrf.mxu2 }
 0x354   : > { %v1485_v19 = vadd.f32 %v3408_v47, %v1484_v18 }
 0x356   : > { %v1508_v21 = vmax.f32 %v1485_v19, 0.0 }
 0x358   : > { %v1518_v22 = vpack.c.bf16 %v1508_v21, %v1507_v20 }
 0x35a   : > { %1622 = vmatmul.bf16.gmra.mxu3 %v1518_v22 }
 0x35b   : > { %v1487_v24 = vpop.f32.mrf.mxu2 }
 0x35c   : > { %v1488_v27 = vadd.f32 %v3408_v47, %v1487_v24 }
 0x35e   : > { %v1509_v31 = vmax.f32 %v1488_v27, 0.0 }
 0x363   : > { %v1489_v28 = vpop.f32.mrf.mxu2 }
 0x364   : > { %v1490_v29 = vadd.f32 %v3408_v47, %v1489_v28 }
 0x366   : > { %v1510_v32 = vmax.f32 %v1490_v29, 0.0 }
 0x368   : > { %v1519_v33 = vpack.c.bf16 %v1510_v32, %v1509_v31 }
 0x36a   : > { %1627 = vmatmul.bf16.gmra.mxu3 %v1519_v33 }
 0x36b   : > { %v1492_v35 = vpop.f32.mrf.mxu2 }
 0x36c   : > { %v1493_v38 = vadd.f32 %v3408_v47, %v1492_v35 }
 0x36e   : > { %v1511_v41 = vmax.f32 %v1493_v38, 0.0  ;;  %v1779_v38 = vlaneseq }
 0x373   : > { %v1494_v39 = vpop.f32.mrf.mxu2 }
 0x374   : > { %v1495_v40 = vadd.f32 %v3408_v47, %v1494_v39  ;;  %v3429_v39 = vand.u32 127, %v1779_v38 }
 0x376   : > { %v1512_v42 = vmax.f32 %v1495_v40, 0.0  ;;  %v3434_v40 = vld [vmem:[%s3707_s8] ss:$0 sm:$0xff]  ;;  %vm1781_vm0 = vcmp.lt.s32.totalorder %v3429_v39, 8 }
 0x378   : > { %v1520_v46 = vpack.c.bf16 %v1512_v42, %v1511_v41 }
 0x37a   : > { %1632 = vmatmul.bf16.gmra.mxu3 %v1520_v46 }
 0x38d   : > { %v1598_v48 = vpop.f32.mrf.mxu3 }
 0x38e   : > { %v1599_v50 = vadd.f32 %v2803_v49, %v1598_v48 }
 0x390   : > { %v1638_v51 = vmax.f32 %v1599_v50, 0.0 }
 0x395   : > { %v1600_v43 = vpop.f32.mrf.mxu3 }
 0x396   : > { %v1601_v45 = vadd.f32 %v2803_v49, %v1600_v43 }
 0x398   : > { %v1639_v52 = vmax.f32 %v1601_v45, 0.0 }
 0x39a   : > { %v1654_v53 = vpack.c.bf16 %v1639_v52, %v1638_v51 }
 0x39c   : > { %1738 = vmatmul.bf16.vlgmr.msrb.gmra.mxu0 %v1654_v53 }
 0x39d   : > { %v1603_v47 = vpop.f32.mrf.mxu3 }
 0x39e   : > { %v1604_v54 = vadd.f32 %v2803_v49, %v1603_v47 }
 0x3a0   : > { %v1640_v57 = vmax.f32 %v1604_v54, 0.0 }
 0x3a5   : > { %v1605_v55 = vpop.f32.mrf.mxu3 }
 0x3a6   : > { %v1606_v56 = vadd.f32 %v2803_v49, %v1605_v55 }
 0x3a8   : > { %v1641_v58 = vmax.f32 %v1606_v56, 0.0 }
 0x3aa   : > { %v1655_v59 = vpack.c.bf16 %v1641_v58, %v1640_v57 }
 0x3ac   : > { %1743 = vmatmul.bf16.gmra.mxu0 %v1655_v59 }
 0x3ad   : > { %v1608_v60 = vpop.f32.mrf.mxu3 }
 0x3ae   : > { %v1609_v61 = vadd.f32 %v2803_v49, %v1608_v60 }
 0x3b0   : > { %v1642_v0 = vmax.f32 %v1609_v61, 0.0 }
 0x3b5   : > { %v1610_v62 = vpop.f32.mrf.mxu3 }
 0x3b6   : > { %v1611_v63 = vadd.f32 %v2803_v49, %v1610_v62 }
 0x3b8   : > { %v1643_v1 = vmax.f32 %v1611_v63, 0.0 }
 0x3ba   : > { %v1656_v2 = vpack.c.bf16 %v1643_v1, %v1642_v0 }
 0x3bc   : > { %1748 = vmatmul.bf16.gmra.mxu0 %v1656_v2 }
 0x3bd   : > { %v1613_v3 = vpop.f32.mrf.mxu3 }
 0x3be   : > { %v1614_v4 = vadd.f32 %v2803_v49, %v1613_v3 }
 0x3c0   : > { %v1644_v7 = vmax.f32 %v1614_v4, 0.0 }
 0x3c5   : > { %v1615_v5 = vpop.f32.mrf.mxu3 }
 0x3c6   : > { %v1616_v6 = vadd.f32 %v2803_v49, %v1615_v5 }
 0x3c8   : > { %v1645_v8 = vmax.f32 %v1616_v6, 0.0 }
 0x3ca   : > { %v1657_v9 = vpack.c.bf16 %v1645_v8, %v1644_v7 }
 0x3cc   : > { %1753 = vmatmul.bf16.gmra.mxu0 %v1657_v9 }
 0x3cd   : > { %v1618_v10 = vpop.f32.mrf.mxu3 }
 0x3ce   : > { %v1619_v11 = vadd.f32 %v2803_v49, %v1618_v10 }
 0x3d0   : > { %v1646_v14 = vmax.f32 %v1619_v11, 0.0 }
 0x3d5   : > { %v1620_v12 = vpop.f32.mrf.mxu3 }
 0x3d6   : > { %v1621_v13 = vadd.f32 %v2803_v49, %v1620_v12 }
 0x3d8   : > { %v1647_v15 = vmax.f32 %v1621_v13, 0.0 }
 0x3da   : > { %v1658_v16 = vpack.c.bf16 %v1647_v15, %v1646_v14 }
 0x3dc   : > { %1758 = vmatmul.bf16.gmra.mxu0 %v1658_v16 }
 0x3dd   : > { %v1623_v17 = vpop.f32.mrf.mxu3 }
 0x3de   : > { %v1624_v18 = vadd.f32 %v2803_v49, %v1623_v17 }
 0x3e0   : > { %v1648_v21 = vmax.f32 %v1624_v18, 0.0 }
 0x3e5   : > { %v1625_v19 = vpop.f32.mrf.mxu3 }
 0x3e6   : > { %v1626_v20 = vadd.f32 %v2803_v49, %v1625_v19 }
 0x3e8   : > { %v1649_v22 = vmax.f32 %v1626_v20, 0.0 }
 0x3ea   : > { %v1659_v23 = vpack.c.bf16 %v1649_v22, %v1648_v21 }
 0x3ec   : > { %1763 = vmatmul.bf16.gmra.mxu0 %v1659_v23 }
 0x3ed   : > { %v1628_v24 = vpop.f32.mrf.mxu3 }
 0x3ee   : > { %v1629_v25 = vadd.f32 %v2803_v49, %v1628_v24 }
 0x3f0   : > { %v1650_v28 = vmax.f32 %v1629_v25, 0.0 }
 0x3f5   : > { %v1630_v26 = vpop.f32.mrf.mxu3 }
 0x3f6   : > { %v1631_v27 = vadd.f32 %v2803_v49, %v1630_v26 }
 0x3f8   : > { %v1651_v29 = vmax.f32 %v1631_v27, 0.0 }
 0x3fa   : > { %v1660_v30 = vpack.c.bf16 %v1651_v29, %v1650_v28 }
 0x3fc   : > { %1768 = vmatmul.bf16.gmra.mxu0 %v1660_v30 }
 0x3fd   : > { %v1633_v31 = vpop.f32.mrf.mxu3 }
 0x3fe   : > { %v1634_v32 = vadd.f32 %v2803_v49, %v1633_v31 }
 0x400   : > { %v1652_v35 = vmax.f32 %v1634_v32, 0.0 }
 0x405   : > { %v1635_v33 = vpop.f32.mrf.mxu3 }
 0x406   : > { %v1636_v34 = vadd.f32 %v2803_v49, %v1635_v33 }
 0x408   : > { %v1653_v36 = vmax.f32 %v1636_v34, 0.0 }
 0x40a   : > { %v1661_v37 = vpack.c.bf16 %v1653_v36, %v1652_v35 }
 0x40c   : > { %1773 = vmatmul.bf16.gmra.mxu0 %v1661_v37 }
 0x419   : > { %v1739_v41 = vpop.f32.mrf.mxu0 }
 0x41a   : > { %v1740_v42 = vadd.f32 %v3434_v40, %v1739_v41 }
 0x41c   : > { %v1782_v44 = vsel %vm1781_vm0, %v1740_v42, -1e+30 }
 0x41d   : > { %1798 = vmax.xlane.f32.xlu0 %v1782_v44 }
 0x421   : > { %v1741_v46 = vpop.f32.mrf.mxu0 }
 0x422   : > { %v1742_v48 = vadd.f32 %v3434_v40, %v1741_v46 }
 0x424   : > { %v3443_v49 = vsel %vm1781_vm0, %v1742_v48, -1e+30 }
 0x425   : > { %1800 = vmax.xlane.f32.xlu0 %v3443_v49 }
 0x429   : > { %v1744_v50 = vpop.f32.mrf.mxu0 }
 0x42a   : > { %v1745_v43 = vadd.f32 %v3434_v40, %v1744_v50 }
 0x42c   : > { %v3449_v45 = vsel %vm1781_vm0, %v1745_v43, -1e+30 }
 0x42d   : > { %1802 = vmax.xlane.f32.xlu1 %v3449_v45 }
 0x431   : > { %v1746_v51 = vpop.f32.mrf.mxu0 }
 0x432   : > { %v1747_v52 = vadd.f32 %v3434_v40, %v1746_v51 }
 0x434   : > { %v3455_v53 = vsel %vm1781_vm0, %v1747_v52, -1e+30 }
 0x435   : > { %1804 = vmax.xlane.f32.xlu1 %v3455_v53 }
 0x439   : > { %v1749_v47 = vpop.f32.mrf.mxu0 }
 0x43a   : > { %v1750_v54 = vadd.f32 %v3434_v40, %v1749_v47 }
 0x43c   : > { %v3461_v55 = vsel %vm1781_vm0, %v1750_v54, -1e+30 }
 0x43d   : > { %1806 = vmax.xlane.f32.xlu2 %v3461_v55 }
 0x441   : > { %v1751_v56 = vpop.f32.mrf.mxu0 }
 0x442   : > { %v1752_v57 = vadd.f32 %v3434_v40, %v1751_v56 }
 0x444   : > { %v3467_v58 = vsel %vm1781_vm0, %v1752_v57, -1e+30 }
 0x445   : > { %1808 = vmax.xlane.f32.xlu2 %v3467_v58 }
 0x449   : > { %v1754_v59 = vpop.f32.mrf.mxu0 }
 0x44a   : > { %v1755_v60 = vadd.f32 %v3434_v40, %v1754_v59 }
 0x44c   : > { %v3473_v61 = vsel %vm1781_vm0, %v1755_v60, -1e+30 }
 0x44d   : > { %1810 = vmax.xlane.f32.xlu0 %v3473_v61 }
 0x451   : > { %v1756_v62 = vpop.f32.mrf.mxu0 }
 0x452   : > { %v1757_v63 = vadd.f32 %v3434_v40, %v1756_v62 }
 0x454   : > { %v3479_v0 = vsel %vm1781_vm0, %v1757_v63, -1e+30 }
 0x455   : > { %1812 = vmax.xlane.f32.xlu1 %v3479_v0 }
 0x459   : > { %v1759_v1 = vpop.f32.mrf.mxu0 }
 0x45a   : > { %v1760_v2 = vadd.f32 %v3434_v40, %v1759_v1 }
 0x45c   : > { %v3485_v3 = vsel %vm1781_vm0, %v1760_v2, -1e+30 }
 0x45d   : > { %1814 = vmax.xlane.f32.xlu2 %v3485_v3 }
 0x461   : > { %v1761_v4 = vpop.f32.mrf.mxu0 }
 0x462   : > { %v1762_v5 = vadd.f32 %v3434_v40, %v1761_v4 }
 0x464   : > { %v3491_v6 = vsel %vm1781_vm0, %v1762_v5, -1e+30 }
 0x465   : > { %1816 = vmax.xlane.f32.xlu0 %v3491_v6 }
 0x469   : > { %v1764_v7 = vpop.f32.mrf.mxu0 }
 0x46a   : > { %v1765_v8 = vadd.f32 %v3434_v40, %v1764_v7 }
 0x46c   : > { %v3497_v9 = vsel %vm1781_vm0, %v1765_v8, -1e+30 }
 0x46d   : > { %1818 = vmax.xlane.f32.xlu1 %v3497_v9 }
 0x471   : > { %v1766_v10 = vpop.f32.mrf.mxu0 }
 0x472   : > { %v1767_v11 = vadd.f32 %v3434_v40, %v1766_v10 }
 0x474   : > { %v3503_v12 = vsel %vm1781_vm0, %v1767_v11, -1e+30 }
 0x475   : > { %1820 = vmax.xlane.f32.xlu2 %v3503_v12 }
 0x479   : > { %v1769_v13 = vpop.f32.mrf.mxu0 }
 0x47a   : > { %v1770_v14 = vadd.f32 %v3434_v40, %v1769_v13 }
 0x47c   : > { %v3509_v15 = vsel %vm1781_vm0, %v1770_v14, -1e+30 }
 0x47d   : > { %1822 = vmax.xlane.f32.xlu0 %v3509_v15 }
 0x481   : > { %v1771_v16 = vpop.f32.mrf.mxu0 }
 0x482   : > { %v1772_v17 = vadd.f32 %v3434_v40, %v1771_v16 }
 0x484   : > { %v3515_v18 = vsel %vm1781_vm0, %v1772_v17, -1e+30 }
 0x485   : > { %1824 = vmax.xlane.f32.xlu1 %v3515_v18 }
 0x489   : > { %v1774_v19 = vpop.f32.mrf.mxu0 }
 0x48a   : > { %v1775_v20 = vadd.f32 %v3434_v40, %v1774_v19 }
 0x48c   : > { %v3521_v21 = vsel %vm1781_vm0, %v1775_v20, -1e+30 }
 0x48d   : > { %1826 = vmax.xlane.f32.xlu2 %v3521_v21 }
 0x490   : > { %v1799_v22 = vpop.xlane.xlu0 %1798 }
 0x491   : > { %v1830_v23 = vsub.f32 %v1782_v44, %v1799_v22  ;;  %v1776_v24 = vpop.f32.mrf.mxu0 }
 0x492   : > { %v1777_v25 = vadd.f32 %v3434_v40, %v1776_v24 }
 0x493   : > { %v1846_v26 = vmul.f32 1.442695, %v1830_v23 }
 0x494   : > { %v3527_v27 = vsel %vm1781_vm0, %v1777_v25, -1e+30 }
 0x495   : > { %2805 = vpow2.f32 %v1846_v26  ;;  %1828 = vmax.xlane.f32.xlu0 %v3527_v27 }
 0x498   : > { %v1801_v28 = vpop.xlane.xlu0 %1800 }
 0x499   : > { %v1831_v29 = vsub.f32 %v3443_v49, %v1801_v28 }
 0x49b   : > { %v3531_v30 = vpop.eup %2805  ;;  %v1848_v31 = vmul.f32 1.442695, %v1831_v29 }
 0x49c   : > { %1878 = vadd.xlane.f32.xlu1 %v3531_v30 }
 0x49d   : > { %2807 = vpow2.f32 %v1848_v31 }
 0x4a0   : > { %v1803_v32 = vpop.xlane.xlu1 %1802 }
 0x4a1   : > { %v1832_v33 = vsub.f32 %v3449_v45, %v1803_v32 }
 0x4a3   : > { %v3535_v34 = vpop.eup %2807  ;;  %v1850_v35 = vmul.f32 1.442695, %v1832_v33 }
 0x4a4   : > { %1880 = vadd.xlane.f32.xlu2 %v3535_v34 }
 0x4a5   : > { %2809 = vpow2.f32 %v1850_v35 }
 0x4a8   : > { %v1805_v36 = vpop.xlane.xlu1 %1804 }
 0x4a9   : > { %v1833_v37 = vsub.f32 %v3455_v53, %v1805_v36 }
 0x4ab   : > { %v3539_v38 = vpop.eup %2809  ;;  %v1852_v39 = vmul.f32 1.442695, %v1833_v37 }
 0x4ac   : > { %1882 = vadd.xlane.f32.xlu0 %v3539_v38 }
 0x4ad   : > { %2811 = vpow2.f32 %v1852_v39 }
 0x4b0   : > { %v1807_v40 = vpop.xlane.xlu2 %1806 }
 0x4b1   : > { %v1834_v41 = vsub.f32 %v3461_v55, %v1807_v40 }
 0x4b3   : > { %v3543_v42 = vpop.eup %2811  ;;  %v1854_v44 = vmul.f32 1.442695, %v1834_v41 }
 0x4b4   : > { %1884 = vadd.xlane.f32.xlu1 %v3543_v42 }
 0x4b5   : > { %2813 = vpow2.f32 %v1854_v44 }
 0x4b8   : > { %v1809_v46 = vpop.xlane.xlu2 %1808 }
 0x4b9   : > { %v1835_v48 = vsub.f32 %v3467_v58, %v1809_v46 }
 0x4bb   : > { %v3547_v49 = vpop.eup %2813  ;;  %v1856_v50 = vmul.f32 1.442695, %v1835_v48 }
 0x4bc   : > { %1886 = vadd.xlane.f32.xlu2 %v3547_v49 }
 0x4bd   : > { %2815 = vpow2.f32 %v1856_v50 }
 0x4c0   : > { %v1811_v43 = vpop.xlane.xlu0 %1810 }
 0x4c1   : > { %v1836_v45 = vsub.f32 %v3473_v61, %v1811_v43 }
 0x4c3   : > { %v3551_v51 = vpop.eup %2815  ;;  %v1858_v52 = vmul.f32 1.442695, %v1836_v45 }
 0x4c4   : > { %1888 = vadd.xlane.f32.xlu0 %v3551_v51 }
 0x4c5   : > { %2817 = vpow2.f32 %v1858_v52 }
 0x4c8   : > { %v1813_v53 = vpop.xlane.xlu1 %1812 }
 0x4c9   : > { %v1837_v47 = vsub.f32 %v3479_v0, %v1813_v53 }
 0x4cb   : > { %v3555_v54 = vpop.eup %2817  ;;  %v1860_v55 = vmul.f32 1.442695, %v1837_v47 }
 0x4cc   : > { %1890 = vadd.xlane.f32.xlu1 %v3555_v54 }
 0x4cd   : > { %2819 = vpow2.f32 %v1860_v55 }
 0x4d0   : > { %v1815_v56 = vpop.xlane.xlu2 %1814 }
 0x4d1   : > { %v1838_v57 = vsub.f32 %v3485_v3, %v1815_v56 }
 0x4d3   : > { %v3559_v58 = vpop.eup %2819  ;;  %v1862_v59 = vmul.f32 1.442695, %v1838_v57 }
 0x4d4   : > { %1892 = vadd.xlane.f32.xlu2 %v3559_v58 }
 0x4d5   : > { %2821 = vpow2.f32 %v1862_v59 }
 0x4d8   : > { %v1817_v60 = vpop.xlane.xlu0 %1816 }
 0x4d9   : > { %v1839_v61 = vsub.f32 %v3491_v6, %v1817_v60 }
 0x4db   : > { %v3563_v62 = vpop.eup %2821  ;;  %v1864_v63 = vmul.f32 1.442695, %v1839_v61 }
 0x4dc   : > { %1894 = vadd.xlane.f32.xlu0 %v3563_v62 }
 0x4dd   : > { %2823 = vpow2.f32 %v1864_v63 }
 0x4e0   : > { %v1819_v0 = vpop.xlane.xlu1 %1818 }
 0x4e1   : > { %v1840_v1 = vsub.f32 %v3497_v9, %v1819_v0 }
 0x4e3   : > { %v3567_v2 = vpop.eup %2823  ;;  %v1866_v3 = vmul.f32 1.442695, %v1840_v1 }
 0x4e4   : > { %1896 = vadd.xlane.f32.xlu1 %v3567_v2 }
 0x4e5   : > { %2825 = vpow2.f32 %v1866_v3 }
 0x4e8   : > { %v1821_v4 = vpop.xlane.xlu2 %1820 }
 0x4e9   : > { %v1841_v5 = vsub.f32 %v3503_v12, %v1821_v4 }
 0x4eb   : > { %v3571_v7 = vpop.eup %2825  ;;  %v1868_v6 = vmul.f32 1.442695, %v1841_v5 }
 0x4ec   : > { %1898 = vadd.xlane.f32.xlu2 %v3571_v7 }
 0x4ed   : > { %2827 = vpow2.f32 %v1868_v6 }
 0x4f0   : > { %v1823_v8 = vpop.xlane.xlu0 %1822 }
 0x4f1   : > { %v1842_v10 = vsub.f32 %v3509_v15, %v1823_v8 }
 0x4f3   : > { %v3575_v11 = vpop.eup %2827  ;;  %v1870_v9 = vmul.f32 1.442695, %v1842_v10 }
 0x4f4   : > { %1900 = vadd.xlane.f32.xlu0 %v3575_v11 }
 0x4f5   : > { %2829 = vpow2.f32 %v1870_v9 }
 0x4f8   : > { %v1825_v13 = vpop.xlane.xlu1 %1824 }
 0x4f9   : > { %v1843_v14 = vsub.f32 %v3515_v18, %v1825_v13 }
 0x4fb   : > { %v3579_v16 = vpop.eup %2829  ;;  %v1872_v12 = vmul.f32 1.442695, %v1843_v14 }
 0x4fc   : > { %1902 = vadd.xlane.f32.xlu1 %v3579_v16 }
 0x4fd   : > { %2831 = vpow2.f32 %v1872_v12 }
 0x500   : > { %v1827_v17 = vpop.xlane.xlu2 %1826 }
 0x501   : > { %v1844_v19 = vsub.f32 %v3521_v21, %v1827_v17 }
 0x503   : > { %v3583_v20 = vpop.eup %2831  ;;  %v1874_v15 = vmul.f32 1.442695, %v1844_v19 }
 0x504   : > { %1904 = vadd.xlane.f32.xlu2 %v3583_v20 }
 0x505   : > { %2833 = vpow2.f32 %v1874_v15 }
 0x508   : > { %v1829_v22 = vpop.xlane.xlu0 %1828 }
 0x509   : > { %v1845_v23 = vsub.f32 %v3527_v27, %v1829_v22 }
 0x50b   : > { %v3587_v24 = vpop.eup %2833  ;;  %v1876_v18 = vmul.f32 1.442695, %v1845_v23 }
 0x50c   : > { %1906 = vadd.xlane.f32.xlu0 %v3587_v24 }
 0x50d   : > { %2835 = vpow2.f32 %v1876_v18 }
 0x50f   : > { %v1879_v25 = vpop.xlane.xlu1 %1878 }
 0x510   : > { %2837 = vrcp.f32 %v1879_v25  ;;  %v1921_v32 = vand.u32 2147483648, %v1879_v25  ;;  %v1919_v27 = vand.u32 2147483647, %v1879_v25  ;;  %vm1915_vm2 = vweird.f32 %v1879_v25 }
 0x512   : > { %v1922_v37 = vor.u32 1.1754944e-38, %v1921_v32  ;;  %vm1920_vm4 = vcmp.eq.f32.partialorder %v1919_v27, 8.507059e+37 }
 0x513   : > { %v3590_v26 = vpop.eup %2835 }
 0x514   : > { %1908 = vadd.xlane.f32.xlu1 %v3590_v26 }
 0x516   : > { %v2838_v21 = vpop.eup %2837 }
 0x517   : > { %v1911_v28 = vmul.f32 %v2838_v21, %v1879_v25  ;;  %v1881_v29 = vpop.xlane.xlu2 %1880  ;;  %vm1916_vm1 = vweird.f32 %v2838_v21 }
 0x518   : > { %2839 = vrcp.f32 %v1881_v29  ;;  %vm1917_vm3 = vmor %vm1915_vm2, %vm1916_vm1  ;;  %v1936_v50 = vand.u32 2147483648, %v1881_v29  ;;  %v1934_v45 = vand.u32 2147483647, %v1881_v29  ;;  %vm1930_vm6 = vweird.f32 %v1881_v29 }
 0x519   : > { %v1912_v31 = vsub.f32 1.0, %v1911_v28 }
 0x51a   : > { %v1937_v47 = vor.u32 1.1754944e-38, %v1936_v50  ;;  %vm1935_vm8 = vcmp.eq.f32.partialorder %v1934_v45, 8.507059e+37 }
 0x51b   : > { %v1913_v33 = vmul.f32 %v2838_v21, %v1912_v31 }
 0x51d   : > { %v1914_v35 = vadd.f32 %v2838_v21, %v1913_v33 }
 0x51e   : > { %v2840_v36 = vpop.eup %2839 }
 0x51f   : > { %v1918_v39 = vsel %vm1917_vm3, %v2838_v21, %v1914_v35  ;;  %v1926_v40 = vmul.f32 %v2840_v36, %v1881_v29  ;;  %v1883_v41 = vpop.xlane.xlu0 %1882  ;;  %vm1931_vm5 = vweird.f32 %v2840_v36 }
 0x520   : > { %v1923_v44 = vsel %vm1920_vm4, %v1922_v37, %v1918_v39  ;;  %2841 = vrcp.f32 %v1883_v41  ;;  %vm1932_vm7 = vmor %vm1930_vm6, %vm1931_vm5  ;;  %v1951_v61 = vand.u32 2147483648, %v1883_v41  ;;  %v1949_v0 = vand.u32 2147483647, %v1883_v41 }
 0x521   : > { %v1924_v46 = vmul.f32 %v3531_v30, %v1923_v44  ;;  %v1927_v48 = vsub.f32 1.0, %v1926_v40  ;;  %vm1945_vm10 = vweird.f32 %v1883_v41 }
 0x522   : > { %v1952_v4 = vor.u32 1.1754944e-38, %v1951_v61  ;;  %vm1950_vm12 = vcmp.eq.f32.partialorder %v1949_v0, 8.507059e+37 }
 0x523   : > { %2150 = vst [vmem:[%s3708_s10] sm:$0xff] %v1924_v46  ;;  %v1928_v43 = vmul.f32 %v2840_v36, %v1927_v48 }
 0x525   : > { %v1929_v52 = vadd.f32 %v2840_v36, %v1928_v43 }
 0x526   : > { %v2842_v53 = vpop.eup %2841 }
 0x527   : > { %v1933_v55 = vsel %vm1932_vm7, %v2840_v36, %v1929_v52  ;;  %v1941_v56 = vmul.f32 %v2842_v53, %v1883_v41  ;;  %v1885_v57 = vpop.xlane.xlu1 %1884  ;;  %vm1946_vm9 = vweird.f32 %v2842_v53 }
 0x528   : > { %v1938_v59 = vsel %vm1935_vm8, %v1937_v47, %v1933_v55  ;;  %2843 = vrcp.f32 %v1885_v57  ;;  %vm1947_vm11 = vmor %vm1945_vm10, %vm1946_vm9  ;;  %v1966_v13 = vand.u32 2147483648, %v1885_v57  ;;  %v1964_v12 = vand.u32 2147483647, %v1885_v57 }
 0x529   : > { %v1939_v30 = vmul.f32 %v3535_v34, %v1938_v59  ;;  %v1942_v60 = vsub.f32 1.0, %v1941_v56  ;;  %vm1960_vm14 = vweird.f32 %v1885_v57 }
 0x52a   : > { %v1967_v15 = vor.u32 1.1754944e-38, %v1966_v13  ;;  %vm1965_vm0 = vcmp.eq.f32.partialorder %v1964_v12, 8.507059e+37 }
 0x52b   : > { %2151 = vst [vmem:[%s3708_s10 + $0x8] sm:$0xff] %v1939_v30  ;;  %v1943_v63 = vmul.f32 %v2842_v53, %v1942_v60 }
 0x52d   : > { %v1944_v1 = vadd.f32 %v2842_v53, %v1943_v63 }
 0x52e   : > { %v2844_v3 = vpop.eup %2843 }
 0x52f   : > { %v1948_v5 = vsel %vm1947_vm11, %v2842_v53, %v1944_v1  ;;  %v1956_v6 = vmul.f32 %v2844_v3, %v1885_v57  ;;  %v1887_v8 = vpop.xlane.xlu2 %1886  ;;  %vm1961_vm13 = vweird.f32 %v2844_v3 }
 0x530   : > { %v1953_v10 = vsel %vm1950_vm12, %v1952_v4, %v1948_v5  ;;  %2845 = vrcp.f32 %v1887_v8  ;;  %vm1962_vm15 = vmor %vm1960_vm14, %vm1961_vm13  ;;  %v1981_v28 = vand.u32 2147483648, %v1887_v8  ;;  %v1979_v31 = vand.u32 2147483647, %v1887_v8 }
 0x531   : > { %v1954_v34 = vmul.f32 %v3539_v38, %v1953_v10  ;;  %v1957_v9 = vsub.f32 1.0, %v1956_v6  ;;  %vm1975_vm2 = vweird.f32 %v1887_v8 }
 0x532   : > { %v1982_v27 = vor.u32 1.1754944e-38, %v1981_v28  ;;  %vm1980_vm4 = vcmp.eq.f32.partialorder %v1979_v31, 8.507059e+37 }
 0x533   : > { %2152 = vst [vmem:[%s3708_s10 + $0x10] sm:$0xff] %v1954_v34  ;;  %v1958_v14 = vmul.f32 %v2844_v3, %v1957_v9 }
 0x535   : > { %v1959_v17 = vadd.f32 %v2844_v3, %v1958_v14 }
 0x536   : > { %v2846_v19 = vpop.eup %2845 }
 0x537   : > { %v1963_v22 = vsel %vm1962_vm15, %v2844_v3, %v1959_v17  ;;  %v1971_v23 = vmul.f32 %v2846_v19, %v1887_v8  ;;  %v1889_v18 = vpop.xlane.xlu0 %1888  ;;  %vm1976_vm1 = vweird.f32 %v2846_v19 }
 0x538   : > { %v1968_v25 = vsel %vm1965_vm0, %v1967_v15, %v1963_v22  ;;  %2847 = vrcp.f32 %v1889_v18  ;;  %vm1977_vm3 = vmor %vm1975_vm2, %vm1976_vm1  ;;  %v1996_v41 = vand.u32 2147483648, %v1889_v18  ;;  %v1994_v46 = vand.u32 2147483647, %v1889_v18 }
 0x539   : > { %v1969_v38 = vmul.f32 %v3543_v42, %v1968_v25  ;;  %v1972_v21 = vsub.f32 1.0, %v1971_v23  ;;  %vm1990_vm6 = vweird.f32 %v1889_v18 }
 0x53a   : > { %v1997_v43 = vor.u32 1.1754944e-38, %v1996_v41  ;;  %vm1995_vm8 = vcmp.eq.f32.partialorder %v1994_v46, 8.507059e+37 }
 0x53b   : > { %2153 = vst [vmem:[%s3708_s10 + $0x18] sm:$0xff] %v1969_v38  ;;  %v1973_v29 = vmul.f32 %v2846_v19, %v1972_v21 }
 0x53d   : > { %v1974_v32 = vadd.f32 %v2846_v19, %v1973_v29 }
 0x53e   : > { %v2848_v33 = vpop.eup %2847 }
 0x53f   : > { %v1978_v35 = vsel %vm1977_vm3, %v2846_v19, %v1974_v32  ;;  %v1986_v36 = vmul.f32 %v2848_v33, %v1889_v18  ;;  %v1891_v37 = vpop.xlane.xlu1 %1890  ;;  %vm1991_vm5 = vweird.f32 %v2848_v33 }
 0x540   : > { %v1983_v39 = vsel %vm1980_vm4, %v1982_v27, %v1978_v35  ;;  %2849 = vrcp.f32 %v1891_v37  ;;  %vm1992_vm7 = vmor %vm1990_vm6, %vm1991_vm5  ;;  %v2011_v56 = vand.u32 2147483648, %v1891_v37  ;;  %v2009_v59 = vand.u32 2147483647, %v1891_v37 }
 0x541   : > { %v1984_v42 = vmul.f32 %v3547_v49, %v1983_v39  ;;  %v1987_v40 = vsub.f32 1.0, %v1986_v36  ;;  %vm2005_vm10 = vweird.f32 %v1891_v37 }
 0x542   : > { %v2012_v61 = vor.u32 1.1754944e-38, %v2011_v56  ;;  %vm2010_vm12 = vcmp.eq.f32.partialorder %v2009_v59, 8.507059e+37 }
 0x543   : > { %2154 = vst [vmem:[%s3708_s10 + $0x20] sm:$0xff] %v1984_v42  ;;  %v1988_v44 = vmul.f32 %v2848_v33, %v1987_v40 }
 0x545   : > { %v1989_v48 = vadd.f32 %v2848_v33, %v1988_v44 }
 0x546   : > { %v2850_v50 = vpop.eup %2849 }
 0x547   : > { %v1993_v45 = vsel %vm1992_vm7, %v2848_v33, %v1989_v48  ;;  %v2001_v52 = vmul.f32 %v2850_v50, %v1891_v37  ;;  %v1893_v53 = vpop.xlane.xlu2 %1892  ;;  %vm2006_vm9 = vweird.f32 %v2850_v50 }
 0x548   : > { %v1998_v47 = vsel %vm1995_vm8, %v1997_v43, %v1993_v45  ;;  %2851 = vrcp.f32 %v1893_v53  ;;  %vm2007_vm11 = vmor %vm2005_vm10, %vm2006_vm9  ;;  %v2026_v5 = vand.u32 2147483648, %v1893_v53  ;;  %v2024_v8 = vand.u32 2147483647, %v1893_v53 }
 0x549   : > { %v1999_v49 = vmul.f32 %v3551_v51, %v1998_v47  ;;  %v2002_v55 = vsub.f32 1.0, %v2001_v52  ;;  %vm2020_vm14 = vweird.f32 %v1893_v53 }
 0x54a   : > { %v2027_v9 = vor.u32 1.1754944e-38, %v2026_v5  ;;  %vm2025_vm0 = vcmp.eq.f32.partialorder %v2024_v8, 8.507059e+37 }
 0x54b   : > { %2155 = vst [vmem:[%s3708_s10 + $0x28] sm:$0xff] %v1999_v49  ;;  %v2003_v57 = vmul.f32 %v2850_v50, %v2002_v55 }
 0x54d   : > { %v2004_v30 = vadd.f32 %v2850_v50, %v2003_v57 }
 0x54e   : > { %v2852_v60 = vpop.eup %2851 }
 0x54f   : > { %v2008_v63 = vsel %vm2007_vm11, %v2850_v50, %v2004_v30  ;;  %v2016_v0 = vmul.f32 %v2852_v60, %v1893_v53  ;;  %v1895_v1 = vpop.xlane.xlu0 %1894  ;;  %vm2021_vm13 = vweird.f32 %v2852_v60 }
 0x550   : > { %v2013_v3 = vsel %vm2010_vm12, %v2012_v61, %v2008_v63  ;;  %2853 = vrcp.f32 %v1895_v1  ;;  %vm2022_vm15 = vmor %vm2020_vm14, %vm2021_vm13  ;;  %v2041_v15 = vand.u32 2147483648, %v1895_v1  ;;  %v2039_v23 = vand.u32 2147483647, %v1895_v1 }
 0x551   : > { %v2014_v51 = vmul.f32 %v3555_v54, %v2013_v3  ;;  %v2017_v4 = vsub.f32 1.0, %v2016_v0  ;;  %vm2035_vm2 = vweird.f32 %v1895_v1 }
 0x552   : > { %v2042_v38 = vor.u32 1.1754944e-38, %v2041_v15  ;;  %vm2040_vm4 = vcmp.eq.f32.partialorder %v2039_v23, 8.507059e+37 }
 0x553   : > { %2156 = vst [vmem:[%s3708_s10 + $0x30] sm:$0xff] %v2014_v51  ;;  %v2018_v6 = vmul.f32 %v2852_v60, %v2017_v4 }
 0x555   : > { %v2019_v10 = vadd.f32 %v2852_v60, %v2018_v6 }
 0x556   : > { %v2854_v34 = vpop.eup %2853 }
 0x557   : > { %v2023_v13 = vsel %vm2022_vm15, %v2852_v60, %v2019_v10  ;;  %v2031_v14 = vmul.f32 %v2854_v34, %v1895_v1  ;;  %v1897_v12 = vpop.xlane.xlu1 %1896  ;;  %vm2036_vm1 = vweird.f32 %v2854_v34 }
 0x558   : > { %v2028_v17 = vsel %vm2025_vm0, %v2027_v9, %v2023_v13  ;;  %2855 = vrcp.f32 %v1897_v12  ;;  %vm2037_vm3 = vmor %vm2035_vm2, %vm2036_vm1  ;;  %v2056_v33 = vand.u32 2147483648, %v1897_v12  ;;  %v2054_v35 = vand.u32 2147483647, %v1897_v12 }
 0x559   : > { %v2029_v54 = vmul.f32 %v3559_v58, %v2028_v17  ;;  %v2032_v19 = vsub.f32 1.0, %v2031_v14  ;;  %vm2050_vm6 = vweird.f32 %v1897_v12 }
 0x55a   : > { %v2057_v39 = vor.u32 1.1754944e-38, %v2056_v33  ;;  %vm2055_vm8 = vcmp.eq.f32.partialorder %v2054_v35, 8.507059e+37 }
 0x55b   : > { %2157 = vst [vmem:[%s3708_s10 + $0x38] sm:$0xff] %v2029_v54  ;;  %v2033_v22 = vmul.f32 %v2854_v34, %v2032_v19 }
 0x55d   : > { %v2034_v18 = vadd.f32 %v2854_v34, %v2033_v22 }
 0x55e   : > { %v2856_v25 = vpop.eup %2855 }
 0x55f   : > { %v2038_v21 = vsel %vm2037_vm3, %v2854_v34, %v2034_v18  ;;  %v2046_v28 = vmul.f32 %v2856_v25, %v1897_v12  ;;  %v1899_v29 = vpop.xlane.xlu2 %1898  ;;  %vm2051_vm5 = vweird.f32 %v2856_v25 }
 0x560   : > { %v2043_v31 = vsel %vm2040_vm4, %v2042_v38, %v2038_v21  ;;  %2857 = vrcp.f32 %v1899_v29  ;;  %vm2052_vm7 = vmor %vm2050_vm6, %vm2051_vm5  ;;  %v2071_v48 = vand.u32 2147483648, %v1899_v29  ;;  %v2069_v43 = vand.u32 2147483647, %v1899_v29 }
 0x561   : > { %v2044_v58 = vmul.f32 %v3563_v62, %v2043_v31  ;;  %v2047_v32 = vsub.f32 1.0, %v2046_v28  ;;  %vm2065_vm10 = vweird.f32 %v1899_v29 }
 0x562   : > { %v2072_v53 = vor.u32 1.1754944e-38, %v2071_v48  ;;  %vm2070_vm12 = vcmp.eq.f32.partialorder %v2069_v43, 8.507059e+37 }
 0x563   : > { %2158 = vst [vmem:[%s3708_s10 + $0x40] sm:$0xff] %v2044_v58  ;;  %v2048_v27 = vmul.f32 %v2856_v25, %v2047_v32 }
 0x565   : > { %v2049_v36 = vadd.f32 %v2856_v25, %v2048_v27 }
 0x566   : > { %v2858_v37 = vpop.eup %2857 }
 0x567   : > { %v2053_v42 = vsel %vm2052_vm7, %v2856_v25, %v2049_v36  ;;  %v2061_v40 = vmul.f32 %v2858_v37, %v1899_v29  ;;  %v1901_v41 = vpop.xlane.xlu0 %1900  ;;  %vm2066_vm9 = vweird.f32 %v2858_v37 }
 0x568   : > { %v2058_v44 = vsel %vm2055_vm8, %v2057_v39, %v2053_v42  ;;  %2859 = vrcp.f32 %v1901_v41  ;;  %vm2067_vm11 = vmor %vm2065_vm10, %vm2066_vm9  ;;  %v2086_v59 = vand.u32 2147483648, %v1901_v41  ;;  %v2084_v60 = vand.u32 2147483647, %v1901_v41 }
 0x569   : > { %v2059_v62 = vmul.f32 %v3567_v2, %v2058_v44  ;;  %v2062_v46 = vsub.f32 1.0, %v2061_v40  ;;  %vm2080_vm14 = vweird.f32 %v1901_v41 }
 0x56a   : > { %v2087_v0 = vor.u32 1.1754944e-38, %v2086_v59  ;;  %vm2085_vm0 = vcmp.eq.f32.partialorder %v2084_v60, 8.507059e+37 }
 0x56b   : > { %2159 = vst [vmem:[%s3708_s10 + $0x48] sm:$0xff] %v2059_v62  ;;  %v2063_v50 = vmul.f32 %v2858_v37, %v2062_v46 }
 0x56d   : > { %v2064_v45 = vadd.f32 %v2858_v37, %v2063_v50 }
 0x56e   : > { %v2860_v52 = vpop.eup %2859 }
 0x56f   : > { %v2068_v47 = vsel %vm2067_vm11, %v2858_v37, %v2064_v45  ;;  %v2076_v49 = vmul.f32 %v2860_v52, %v1901_v41  ;;  %v1903_v55 = vpop.xlane.xlu1 %1902  ;;  %vm2081_vm13 = vweird.f32 %v2860_v52 }
 0x570   : > { %v2073_v56 = vsel %vm2070_vm12, %v2072_v53, %v2068_v47  ;;  %2861 = vrcp.f32 %v1903_v55  ;;  %vm2082_vm15 = vmor %vm2080_vm14, %vm2081_vm13  ;;  %v2101_v6 = vand.u32 2147483648, %v1903_v55  ;;  %v2099_v10 = vand.u32 2147483647, %v1903_v55 }
 0x571   : > { %v2074_v2 = vmul.f32 %v3571_v7, %v2073_v56  ;;  %v2077_v57 = vsub.f32 1.0, %v2076_v49  ;;  %vm2095_vm2 = vweird.f32 %v1903_v55 }
 0x572   : > { %v2102_v13 = vor.u32 1.1754944e-38, %v2101_v6  ;;  %vm2100_vm4 = vcmp.eq.f32.partialorder %v2099_v10, 8.507059e+37 }
 0x573   : > { %2160 = vst [vmem:[%s3708_s10 + $0x50] sm:$0xff] %v2074_v2  ;;  %v2078_v30 = vmul.f32 %v2860_v52, %v2077_v57 }
 0x575   : > { %v2079_v61 = vadd.f32 %v2860_v52, %v2078_v30 }
 0x576   : > { %v2862_v63 = vpop.eup %2861 }
 0x577   : > { %v2083_v1 = vsel %vm2082_vm15, %v2860_v52, %v2079_v61  ;;  %v2091_v3 = vmul.f32 %v2862_v63, %v1903_v55  ;;  %v1905_v51 = vpop.xlane.xlu2 %1904  ;;  %vm2096_vm1 = vweird.f32 %v2862_v63 }
 0x578   : > { %v2088_v4 = vsel %vm2085_vm0, %v2087_v0, %v2083_v1  ;;  %2863 = vrcp.f32 %v1905_v51  ;;  %vm2097_vm3 = vmor %vm2095_vm2, %vm2096_vm1  ;;  %v2116_v15 = vand.u32 2147483648, %v1905_v51  ;;  %v2114_v23 = vand.u32 2147483647, %v1905_v51 }
 0x579   : > { %v2089_v7 = vmul.f32 %v3575_v11, %v2088_v4  ;;  %v2092_v5 = vsub.f32 1.0, %v2091_v3  ;;  %vm2110_vm6 = vweird.f32 %v1905_v51 }
 0x57a   : > { %v2117_v38 = vor.u32 1.1754944e-38, %v2116_v15  ;;  %vm2115_vm8 = vcmp.eq.f32.partialorder %v2114_v23, 8.507059e+37 }
 0x57b   : > { %2161 = vst [vmem:[%s3708_s10 + $0x58] sm:$0xff] %v2089_v7  ;;  %v2093_v8 = vmul.f32 %v2862_v63, %v2092_v5 }
 0x57d   : > { %v2094_v34 = vadd.f32 %v2862_v63, %v2093_v8 }
 0x57e   : > { %v2864_v9 = vpop.eup %2863 }
 0x57f   : > { %v2098_v14 = vsel %vm2097_vm3, %v2862_v63, %v2094_v34  ;;  %v2106_v12 = vmul.f32 %v2864_v9, %v1905_v51  ;;  %v1907_v17 = vpop.xlane.xlu0 %1906  ;;  %vm2111_vm5 = vweird.f32 %v2864_v9 }
 0x580   : > { %v2103_v54 = vsel %vm2100_vm4, %v2102_v13, %v2098_v14  ;;  %2865 = vrcp.f32 %v1907_v17  ;;  %vm2112_vm7 = vmor %vm2110_vm6, %vm2111_vm5  ;;  %v2131_v32 = vand.u32 2147483648, %v1907_v17  ;;  %v2129_v27 = vand.u32 2147483647, %v1907_v17 }
 0x581   : > { %v2104_v11 = vmul.f32 %v3579_v16, %v2103_v54  ;;  %v2107_v19 = vsub.f32 1.0, %v2106_v12  ;;  %vm2125_vm10 = vweird.f32 %v1907_v17 }
 0x582   : > { %v2132_v37 = vor.u32 1.1754944e-38, %v2131_v32  ;;  %vm2130_vm12 = vcmp.eq.f32.partialorder %v2129_v27, 8.507059e+37 }
 0x583   : > { %2162 = vst [vmem:[%s3708_s10 + $0x60] sm:$0xff] %v2104_v11  ;;  %v2108_v22 = vmul.f32 %v2864_v9, %v2107_v19 }
 0x585   : > { %v2109_v18 = vadd.f32 %v2864_v9, %v2108_v22 }
 0x586   : > { %v2866_v25 = vpop.eup %2865 }
 0x587   : > { %v2113_v21 = vsel %vm2112_vm7, %v2864_v9, %v2109_v18  ;;  %v2121_v28 = vmul.f32 %v2866_v25, %v1907_v17  ;;  %v1909_v29 = vpop.xlane.xlu1 %1908  ;;  %vm2126_vm9 = vweird.f32 %v2866_v25 }
 0x588   : > { %v2118_v31 = vsel %vm2115_vm8, %v2117_v38, %v2113_v21  ;;  %2867 = vrcp.f32 %v1909_v29  ;;  %vm2127_vm11 = vmor %vm2125_vm10, %vm2126_vm9  ;;  %v2146_v44 = vand.u32 2147483648, %v1909_v29  ;;  %v2144_v46 = vand.u32 2147483647, %v1909_v29 }
 0x589   : > { %v2119_v16 = vmul.f32 %v3583_v20, %v2118_v31  ;;  %v2122_v58 = vsub.f32 1.0, %v2121_v28  ;;  %vm2140_vm14 = vweird.f32 %v1909_v29 }
 0x58a   : > { %v2147_v50 = vor.u32 1.1754944e-38, %v2146_v44  ;;  %vm2145_vm0 = vcmp.eq.f32.partialorder %v2144_v46, 8.507059e+37 }
 0x58b   : > { %2163 = vst [vmem:[%s3708_s10 + $0x68] sm:$0xff] %v2119_v16  ;;  %v2123_v33 = vmul.f32 %v2866_v25, %v2122_v58 }
 0x58d   : > { %v2124_v35 = vadd.f32 %v2866_v25, %v2123_v33 }
 0x58e   : > { %v2868_v36 = vpop.eup %2867 }
 0x58f   : > { %v2128_v39 = vsel %vm2127_vm11, %v2866_v25, %v2124_v35  ;;  %v2136_v42 = vmul.f32 %v2868_v36, %v1909_v29  ;;  %vm2141_vm13 = vweird.f32 %v2868_v36 }
 0x590   : > { %v2133_v40 = vsel %vm2130_vm12, %v2132_v37, %v2128_v39  ;;  %vm2142_vm15 = vmor %vm2140_vm14, %vm2141_vm13 }
 0x591   : > { %v2134_v20 = vmul.f32 %v3587_v24, %v2133_v40  ;;  %v2137_v41 = vsub.f32 1.0, %v2136_v42 }
 0x593   : > { %2164 = vst [vmem:[%s3708_s10 + $0x70] sm:$0xff] %v2134_v20  ;;  %v2138_v62 = vmul.f32 %v2868_v36, %v2137_v41 }
 0x595   : > { %v2139_v48 = vadd.f32 %v2868_v36, %v2138_v62 }
 0x597   : > { %v2143_v43 = vsel %vm2142_vm15, %v2868_v36, %v2139_v48 }
 0x598   : > { %v2148_v45 = vsel %vm2145_vm0, %v2147_v50, %v2143_v43 }
 0x599   : > { %v2149_v52 = vmul.f32 %v3590_v26, %v2148_v45 }
 0x59b   : > { %2165 = vst [vmem:[%s3708_s10 + $0x78] sm:$0xff] %v2149_v52 }
 0x59c PF: > { %s26_s29 = sadd.s32 1, %s3039_s29   ;;  %s3709_s19 = sld [smem:[#allocation15_spill]] }
 0x59d   : > { %p23_p1 = scmp.ge.s32.totalorder %s26_s29, 4   ;;  %s3710_s23 = sld [smem:[#allocation14_spill]] }
 0x59e   : > { %s3711_s25 = smov %s3027_s26  ;;  %s3713_s27 = smov %s3035_s28 }
 0x59f   :  { %25 = sbr.rel (!%p23_p1) target bundleno = 13 (0xd), region = 173 }
 0x5a2   : > { %s3712_s26 = smov %s3709_s19 }
 0x5a3   : > { %s3714_s28 = smov %s3710_s23 }
 0x5a4   :  { %2188 = vsyncpa [#allocation5], 1 }
 0x5a5   :  { %2190 = vsyncpa [#allocation5 + $0x1], 1 }
 0x5a6   :  { %2191 = vsyncpa [#allocation7], 1 }
 0x5a7   :  { %2192 = vsyncpa [#allocation10], 1 }

</bundles_post_ra>
